<compile_context>
chip_gen: v7x
topology: tpu7x:2x2x1
jax: 0.10.0
libtpu: 0.0.40
codegen_flags: <defaults>
</compile_context>

<pallas_src>
import math
import functools

import jax
import jax.numpy as jnp
from jax.experimental import pallas as pl
from jax.experimental.pallas import tpu as pltpu


def gplstm_kernel(gx_ref, wh_ref, theta_ref, h0_ref, c0_ref,
                  out_ref, hn_ref, cn_ref, h_scr, c_scr,
                  *, hidden_size, block_t, seq_len, unroll):
    H = hidden_size
    half = H // 2
    tb = pl.program_id(1)             # axis 0 = batch shard, axis 1 = time block

    # init carried state on the first time-block of this batch shard
    @pl.when(tb == 0)
    def _():
        h_scr[...] = h0_ref[...].astype(jnp.float32)
        c_scr[...] = c0_ref[...].astype(jnp.float32)

    wh = wh_ref[...]        # (H, 4H)  bf16, resident, single-buffered
    theta = theta_ref[...]  # (H, H)   bf16, resident, single-buffered
    inv_norm = 1.0 / math.sqrt(H * 4)          # len(act_set) == 4
    B = h_scr.shape[0]

    # gsk: halves lane-tile aligned -> XLU roll + select (no per-step copy);
    # otherwise keep the sub-tile concatenate (cheap at small H).
    use_roll = (half % 128 == 0)
    if use_roll:
        first_half = jax.lax.broadcasted_iota(jnp.int32, (B, H), 1) < half

    def step(k, carry):
        hx, cx = carry                                      # f32 (B, H)

        # ---- basis_linear(hx) (uncertain_position == 1, eval mode) ----
        basis = jnp.dot(hx.astype(theta.dtype), theta,
                        preferred_element_type=jnp.float32)  # (B, H) f32
        cos_b = jnp.cos(basis)
        sin_b = jnp.sin(basis)
        if use_roll:
            gsk = (jnp.where(first_half, cos_b, sin_b) +
                   pltpu.roll(jnp.where(first_half, sin_b, cos_b),
                              shift=half, axis=-1))
        else:
            gsk = jnp.concatenate(
                [cos_b[:, :half] + cos_b[:, half:],
                 sin_b[:, :half] + sin_b[:, half:]], axis=-1)
        acc = (jax.nn.sigmoid(basis) + jnp.tanh(basis)
               + jnp.maximum(basis, 0.0) + gsk)
        hb = acc * inv_norm                                 # (B, H)

        # ---- LSTM cell; x @ Wi + b was hoisted out of the recurrence ----
        gates = (gx_ref[k].astype(jnp.float32)              # bf16 stream -> f32
                 + jnp.dot(hb.astype(wh.dtype), wh,
                           preferred_element_type=jnp.float32))   # (B, 4H)

        ingate = jax.nn.sigmoid(gates[:, 0 * H:1 * H])
        forgetgate = jax.nn.sigmoid(gates[:, 1 * H:2 * H])
        cellgate = jnp.tanh(gates[:, 2 * H:3 * H])
        outgate = jax.nn.sigmoid(gates[:, 3 * H:4 * H])

        cy = forgetgate * cx + ingate * cellgate
        hy = outgate * jnp.tanh(cy)

        out_ref[k] = hy.astype(out_ref.dtype)

        if seq_len % block_t != 0:      # static check: mask padded tail steps
            valid = (tb * block_t + k) < seq_len
            hy = jnp.where(valid, hy, hx)
            cy = jnp.where(valid, cy, cx)
        return hy, cy

    h_fin, c_fin = jax.lax.fori_loop(
        0, block_t, step, (h_scr[...], c_scr[...]), unroll=unroll)

    h_scr[...] = h_fin
    c_scr[...] = c_fin

    # final state written only on the last time-block (saves vst pressure,
    # matters on v5e's single store slot)
    @pl.when(tb == pl.num_programs(1) - 1)
    def _():
        hn_ref[...] = h_fin.astype(hn_ref.dtype)
        cn_ref[...] = c_fin.astype(cn_ref.dtype)


def gplstm_forward(emb, h0, c0, params, *, block_t=32, unroll=4,
                   batch_shards=1, gx_buffers=2,
                   matmul_dtype=jnp.bfloat16, stream_dtype=jnp.bfloat16,
                   out_dtype=None):
    T, B, I = emb.shape
    H = h0.shape[-1]
    wi = params["wi"]             # (I, 4H)
    wh = params["wh"]             # (H, 4H)
    b = params["b"]               # (1, 4H) == bias_input + bias_hidden
    theta = params["theta_mean"]  # (H, H)
    out_dtype = emb.dtype if out_dtype is None else out_dtype
    state_dtype = h0.dtype        # hn/cn keep the state dtype (no silent downcast)

    # ---- hoisted input projection: one MXU-friendly matmul with M = T*B ----
    gates_x = (jnp.dot(emb.reshape(T * B, I).astype(matmul_dtype),
                       wi.astype(matmul_dtype),
                       preferred_element_type=jnp.float32)
               + b.astype(jnp.float32))
    # bf16 stream: halves the dominant HBM traffic of the recurrence
    gates_x = gates_x.reshape(T, B, 4 * H).astype(stream_dtype)

    # ---- pad seq to a block_t multiple; batch to 8*batch_shards sublanes ----
    NB = max(1, int(batch_shards))
    TT = max(1, min(block_t, T))
    unroll = max(1, min(int(unroll), TT))
    Tp = pl.cdiv(T, TT) * TT
    Bp = pl.cdiv(B, 8 * NB) * 8 * NB
    Bs = Bp // NB                      # batch rows per shard (per TensorCore)
    if Tp != T or Bp != B:
        gates_x = jnp.pad(gates_x, ((0, Tp - T), (0, Bp - B), (0, 0)))
    h0p = jnp.pad(h0, ((0, Bp - B), (0, 0))) if Bp != B else h0
    c0p = jnp.pad(c0, ((0, Bp - B), (0, 0))) if Bp != B else c0

    # bf16 weights for the in-kernel MXU ops (half the DMA bytes / residency)
    wh_mx = wh.astype(matmul_dtype)
    theta_mx = theta.astype(matmul_dtype)

    # ---- derived VMEM budget (resident weights + buffers + state + slack) ----
    isz = lambda dt: jnp.dtype(dt).itemsize
    resident = (4 * H * H * isz(matmul_dtype)                 # Wh (1 buffer)
                + H * H * isz(matmul_dtype)                   # theta (1 buffer)
                + 2 * Bs * H * isz(state_dtype)               # h0 + c0
                + gx_buffers * TT * Bs * 4 * H * isz(stream_dtype)
                + 2 * TT * Bs * H * isz(out_dtype)            # out double buffer
                + 4 * Bs * H * isz(state_dtype)               # hn / cn
                + 2 * Bs * H * 4)                             # f32 h/c scratch
    try:
        vmem_cap = int(pltpu.get_tpu_info().vmem_capacity_bytes)
    except Exception:
        vmem_cap = 64 * 1024 * 1024                           # v7x-safe fallback
    vmem_budget = int(resident * 1.25) + (8 << 20)
    vmem_budget = max(16 << 20, min(vmem_budget, vmem_cap - (4 << 20)))

    cost = pl.CostEstimate(
        flops=int(10 * T * B * H * H),                        # theta + Wh matmuls
        transcendentals=int(9 * T * B * H),
        bytes_accessed=int(T * B * 4 * H * isz(stream_dtype)
                           + T * B * H * isz(out_dtype)
                           + 5 * H * H * isz(matmul_dtype)
                           + 4 * B * H * isz(state_dtype)),
    )

    kernel = functools.partial(gplstm_kernel, hidden_size=H,
                               block_t=TT, seq_len=T, unroll=unroll)
    invariant = dict(pipeline_mode=pl.Buffered(1))   # loop-invariant operands

    outputs, hn, cn = pl.pallas_call(
        kernel,
        out_shape=(jax.ShapeDtypeStruct((Tp, Bp, H), out_dtype),
                   jax.ShapeDtypeStruct((Bp, H), state_dtype),
                   jax.ShapeDtypeStruct((Bp, H), state_dtype)),
        grid_spec=pltpu.PrefetchScalarGridSpec(
            num_scalar_prefetch=0,
            grid=(NB, Tp // TT),        # (batch shard [parallel], time [serial])
            in_specs=[
                # streamed precomputed gate inputs (bf16, tunable buffer depth)
                pl.BlockSpec((TT, Bs, 4 * H), lambda b, t: (t, b, 0),
                             pipeline_mode=pl.Buffered(gx_buffers)),
                # loop-invariant operands: single-buffered
                pl.BlockSpec((H, 4 * H), lambda b, t: (0, 0), **invariant),  # Wh
                pl.BlockSpec((H, H), lambda b, t: (0, 0), **invariant),      # theta
                pl.BlockSpec((Bs, H), lambda b, t: (b, 0), **invariant),     # h0
                pl.BlockSpec((Bs, H), lambda b, t: (b, 0), **invariant),     # c0
            ],
            out_specs=(
                pl.BlockSpec((TT, Bs, H), lambda b, t: (t, b, 0)),  # outputs
                pl.BlockSpec((Bs, H), lambda b, t: (b, 0)),         # h_n
                pl.BlockSpec((Bs, H), lambda b, t: (b, 0)),         # c_n
            ),
            scratch_shapes=[pltpu.VMEM((Bs, H), jnp.float32),
                            pltpu.VMEM((Bs, H), jnp.float32)],
        ),
        compiler_params=pltpu.CompilerParams(
            dimension_semantics=("parallel", "arbitrary"),
            vmem_limit_bytes=vmem_budget,
        ),
        cost_estimate=cost,
    )(gates_x, wh_mx, theta_mx, h0p, c0p)

    # torch.cat(outputs, 0): list of (B, H) concatenated along dim 0 -> (T*B, H)
    outputs = outputs[:T, :B, :].reshape(T * B, H)
    return outputs, (hn[:B], cn[:B])


def init_params(key, input_size, hidden_size):
    H, I = hidden_size, input_size
    k = jax.random.split(key, 6)
    # nn.Linear default init: U(-1/sqrt(fan_in), 1/sqrt(fan_in))
    s_i = 1.0 / math.sqrt(I)
    s_h = 1.0 / math.sqrt(H)
    wi = jax.random.uniform(k[0], (I, 4 * H), jnp.float32, -s_i, s_i)
    bi = jax.random.uniform(k[1], (4 * H,), jnp.float32, -s_i, s_i)
    wh = jax.random.uniform(k[2], (H, 4 * H), jnp.float32, -s_h, s_h)
    bh = jax.random.uniform(k[3], (4 * H,), jnp.float32, -s_h, s_h)
    stdv = 1.0 / math.sqrt(H)
    theta_mean = jax.random.uniform(k[4], (H, H), jnp.float32, -stdv, stdv)
    theta_lgstd = jax.random.uniform(k[5], (H, H), jnp.float32,
                                     2 * math.log(stdv), math.log(stdv))
    return {"wi": wi, "wh": wh, "b": (bi + bh).reshape(1, 4 * H),
            "theta_mean": theta_mean, "theta_lgstd": theta_lgstd}


def gplstm_reference(emb, h0, c0, params):
    """Pure-JAX f32 reference (same math as the torch forward, eval mode)."""
    H = h0.shape[-1]
    theta = params["theta_mean"]
    wi, wh, b = params["wi"], params["wh"], params["b"]

    def basis_linear(x):
        basis = x @ theta
        half = H // 2
        cos_b, sin_b = jnp.cos(basis), jnp.sin(basis)
        gsk = jnp.concatenate([cos_b[:, :half] + cos_b[:, half:],
                               sin_b[:, :half] + sin_b[:, half:]], -1)
        acc = (jax.nn.sigmoid(basis) + jnp.tanh(basis)
               + jnp.maximum(basis, 0.0) + gsk)
        return acc / math.sqrt(H * 4)

    hx, cx = h0, c0
    outs = []
    for x in emb:
        hb = basis_linear(hx)
        gates = x @ wi + hb @ wh + b
        i = jax.nn.sigmoid(gates[:, 0 * H:1 * H])
        f = jax.nn.sigmoid(gates[:, 1 * H:2 * H])
        g = jnp.tanh(gates[:, 2 * H:3 * H])
        o = jax.nn.sigmoid(gates[:, 3 * H:4 * H])
        cx = f * cx + i * g
        hx = o * jnp.tanh(cx)
        outs.append(hx)
    return jnp.concatenate(outs, 0), (hx, cx)


if __name__ == "__main__":
    key = jax.random.PRNGKey(0)
    I, H = 16, 32

    kp, kx, kh, kc, kx2, kh2, kc2 = jax.random.split(key, 7)
    params = init_params(kp, I, H)

    # --- case 1: base demo (T=8, B=2), two time-blocks, single shard ---
    T, B = 8, 2
    emb = jax.random.normal(kx, (T, B, I), jnp.float32)
    h0 = jax.random.normal(kh, (B, H), jnp.float32)
    c0 = jax.random.normal(kc, (B, H), jnp.float32)

    outputs, (hn, cn) = gplstm_forward(emb, h0, c0, params, block_t=4)
    jax.block_until_ready((outputs, hn, cn))

    ref_out, (ref_h, ref_c) = gplstm_reference(emb, h0, c0, params)
    assert outputs.shape == (T * B, H)
    # bf16 MXU operands / bf16 gx stream (f32 accumulation) vs pure-f32 reference
    assert jnp.allclose(outputs, ref_out, atol=3e-2, rtol=3e-2)
    assert jnp.allclose(hn, ref_h, atol=3e-2, rtol=3e-2)
    assert jnp.allclose(cn, ref_c, atol=3e-2, rtol=3e-2)

    # --- case 2: batch-sharded grid (v7x dual-TC path) + padded time tail ---
    T2, B2 = 6, 16
    emb2 = jax.random.normal(kx2, (T2, B2, I), jnp.float32)
    h02 = jax.random.normal(kh2, (B2, H), jnp.float32)
    c02 = jax.random.normal(kc2, (B2, H), jnp.float32)

    out2, (hn2, cn2) = gplstm_forward(emb2, h02, c02, params,
                                      block_t=4, batch_shards=2, unroll=2)
    jax.block_until_ready((out2, hn2, cn2))

    ref_out2, (ref_h2, ref_c2) = gplstm_reference(emb2, h02, c02, params)
    assert out2.shape == (T2 * B2, H)
    assert jnp.allclose(out2, ref_out2, atol=3e-2, rtol=3e-2)
    assert jnp.allclose(hn2, ref_h2, atol=3e-2, rtol=3e-2)
    assert jnp.allclose(cn2, ref_c2, atol=3e-2, rtol=3e-2)

    print("KERNEL_OK")
</pallas_src>

<mosaic_0001>
module attributes {stable_mosaic.version = 11 : i64} {
  func.func @gplstm_kernel(%arg0: i32, %arg1: i32, %arg2: memref<4x8x128xbf16, #tpu.memory_space<vmem>>, %arg3: memref<32x128xbf16, #tpu.memory_space<vmem>>, %arg4: memref<32x32xbf16, #tpu.memory_space<vmem>>, %arg5: memref<8x32xf32, #tpu.memory_space<vmem>>, %arg6: memref<8x32xf32, #tpu.memory_space<vmem>>, %arg7: memref<4x8x32xf32, #tpu.memory_space<vmem>>, %arg8: memref<8x32xf32, #tpu.memory_space<vmem>>, %arg9: memref<8x32xf32, #tpu.memory_space<vmem>>, %arg10: memref<8x32xf32, #tpu.memory_space<vmem>>, %arg11: memref<8x32xf32, #tpu.memory_space<vmem>>) attributes {dimension_semantics = [#tpu.dimension_semantics<parallel>, #tpu.dimension_semantics<arbitrary>], iteration_bounds = array<i64: 1, 2>, scalar_prefetch = 0 : i64, scratch_operands = 2 : i64, tpu.core_type = #tpu.core_type<tc>, window_params = [{pipeline_mode = #tpu.pipeline_mode<double_buffered>, transform_indices = @transform_0, window_bounds = array<i64: 4, 8, 128>}, {pipeline_mode = #tpu.pipeline_mode<synchronous>, transform_indices = @transform_1, window_bounds = array<i64: 32, 128>}, {pipeline_mode = #tpu.pipeline_mode<synchronous>, transform_indices = @transform_2, window_bounds = array<i64: 32, 32>}, {pipeline_mode = #tpu.pipeline_mode<synchronous>, transform_indices = @transform_3, window_bounds = array<i64: 8, 32>}, {pipeline_mode = #tpu.pipeline_mode<synchronous>, transform_indices = @transform_4, window_bounds = array<i64: 8, 32>}, {transform_indices = @transform_5, window_bounds = array<i64: 4, 8, 32>}, {transform_indices = @transform_6, window_bounds = array<i64: 8, 32>}, {transform_indices = @transform_7, window_bounds = array<i64: 8, 32>}]} {
    %c0_i32 = arith.constant 0 : i32
    %0 = arith.cmpi eq, %arg1, %c0_i32 : i32
    %1 = arith.extui %0 : i1 to i32
    %c0_i32_0 = arith.constant 0 : i32
    %2 = arith.cmpi ne, %1, %c0_i32_0 : i32
    scf.if %2 {
      %c0_62 = arith.constant 0 : index
      %c0_63 = arith.constant 0 : index
      %252 = vector.load %arg5[%c0_62, %c0_63] : memref<8x32xf32, #tpu.memory_space<vmem>>, vector<8x32xf32>
      %c0_64 = arith.constant 0 : index
      %c0_65 = arith.constant 0 : index
      %253 = vector.load %arg10[%c0_64, %c0_65] : memref<8x32xf32, #tpu.memory_space<vmem>>, vector<8x32xf32>
      tpu.vector_store %arg10[%c0_64, %c0_65], %252 {strides = array<i32>} : memref<8x32xf32, #tpu.memory_space<vmem>>, vector<8x32xf32>,
      %c0_66 = arith.constant 0 : index
      %c0_67 = arith.constant 0 : index
      %254 = vector.load %arg6[%c0_66, %c0_67] : memref<8x32xf32, #tpu.memory_space<vmem>>, vector<8x32xf32>
      %c0_68 = arith.constant 0 : index
      %c0_69 = arith.constant 0 : index
      %255 = vector.load %arg11[%c0_68, %c0_69] : memref<8x32xf32, #tpu.memory_space<vmem>>, vector<8x32xf32>
      tpu.vector_store %arg11[%c0_68, %c0_69], %254 {strides = array<i32>} : memref<8x32xf32, #tpu.memory_space<vmem>>, vector<8x32xf32>,
    } else {
    }
    %c0 = arith.constant 0 : index
    %c0_1 = arith.constant 0 : index
    %3 = vector.load %arg3[%c0, %c0_1] : memref<32x128xbf16, #tpu.memory_space<vmem>>, vector<32x128xbf16>
    %c0_2 = arith.constant 0 : index
    %c0_3 = arith.constant 0 : index
    %4 = vector.load %arg4[%c0_2, %c0_3] : memref<32x32xbf16, #tpu.memory_space<vmem>>, vector<32x32xbf16>
    %c0_4 = arith.constant 0 : index
    %c0_5 = arith.constant 0 : index
    %5 = vector.load %arg10[%c0_4, %c0_5] : memref<8x32xf32, #tpu.memory_space<vmem>>, vector<8x32xf32>
    %c0_6 = arith.constant 0 : index
    %c0_7 = arith.constant 0 : index
    %6 = vector.load %arg11[%c0_6, %c0_7] : memref<8x32xf32, #tpu.memory_space<vmem>>, vector<8x32xf32>
    %c0_i32_8 = arith.constant 0 : i32
    %7 = arith.truncf %5 : vector<8x32xf32> to vector<8x32xbf16>
    %cst = arith.constant dense<0.000000e+00> : vector<8x32xf32>
    %8 = tpu.matmul %7, %4, %cst {dimension_numbers = #tpu.dot_dimension_numbers<[1], [0], [0], [1], [0, 0, 1, 1], [], []>} : vector<8x32xbf16>, vector<32x32xbf16>, vector<8x32xf32> -> vector<8x32xf32>
    %9 = math.cos %8 : vector<8x32xf32>
    %10 = math.sin %8 : vector<8x32xf32>
    %11 = vector.extract_strided_slice %9 {offsets = [0, 0], sizes = [8, 16], strides = [1, 1]} : vector<8x32xf32> to vector<8x16xf32>
    %12 = vector.extract_strided_slice %9 {offsets = [0, 16], sizes = [8, 16], strides = [1, 1]} : vector<8x32xf32> to vector<8x16xf32>
    %13 = arith.addf %11, %12 : vector<8x16xf32>
    %14 = vector.extract_strided_slice %10 {offsets = [0, 0], sizes = [8, 16], strides = [1, 1]} : vector<8x32xf32> to vector<8x16xf32>
    %15 = vector.extract_strided_slice %10 {offsets = [0, 16], sizes = [8, 16], strides = [1, 1]} : vector<8x32xf32> to vector<8x16xf32>
    %16 = arith.addf %14, %15 : vector<8x16xf32>
    %17 = tpu.concatenate %13, %16 in 1 : vector<8x16xf32>, vector<8x16xf32> -> vector<8x32xf32>
    %18 = arith.negf %8 : vector<8x32xf32>
    %19 = math.exp %18 : vector<8x32xf32>
    %cst_9 = arith.constant 1.000000e+00 : f32
    %20 = vector.broadcast %cst_9 : f32 to vector<8x32xf32>
    %21 = arith.addf %20, %19 : vector<8x32xf32>
    %22 = arith.divf %20, %21 : vector<8x32xf32>
    %23 = math.tanh %8 : vector<8x32xf32>
    %24 = arith.addf %22, %23 : vector<8x32xf32>
    %cst_10 = arith.constant 0.000000e+00 : f32
    %25 = vector.broadcast %cst_10 : f32 to vector<8x32xf32>
    %26 = arith.maximumf %8, %25 : vector<8x32xf32>
    %27 = arith.addf %24, %26 : vector<8x32xf32>
    %28 = arith.addf %27, %17 : vector<8x32xf32>
    %cst_11 = arith.constant 0.0883883461 : f32
    %29 = vector.broadcast %cst_11 : f32 to vector<8x32xf32>
    %30 = arith.mulf %28, %29 : vector<8x32xf32>
    %31 = arith.index_cast %c0_i32_8 : i32 to index
    %c0_12 = arith.constant 0 : index
    %c0_13 = arith.constant 0 : index
    %32 = vector.load %arg2[%31, %c0_12, %c0_13] : memref<4x8x128xbf16, #tpu.memory_space<vmem>>, vector<1x8x128xbf16>
    %33 = vector.shape_cast %32 : vector<1x8x128xbf16> to vector<8x128xbf16>
    %34 = arith.extf %33 : vector<8x128xbf16> to vector<8x128xf32>
    %35 = arith.truncf %30 : vector<8x32xf32> to vector<8x32xbf16>
    %cst_14 = arith.constant dense<0.000000e+00> : vector<8x128xf32>
    %36 = tpu.matmul %35, %3, %cst_14 {dimension_numbers = #tpu.dot_dimension_numbers<[1], [0], [0], [1], [0, 0, 1, 1], [], []>} : vector<8x32xbf16>, vector<32x128xbf16>, vector<8x128xf32> -> vector<8x128xf32>
    %37 = arith.addf %34, %36 : vector<8x128xf32>
    %38 = vector.extract_strided_slice %37 {offsets = [0, 0], sizes = [8, 32], strides = [1, 1]} : vector<8x128xf32> to vector<8x32xf32>
    %39 = arith.negf %38 : vector<8x32xf32>
    %40 = math.exp %39 : vector<8x32xf32>
    %cst_15 = arith.constant 1.000000e+00 : f32
    %41 = vector.broadcast %cst_15 : f32 to vector<8x32xf32>
    %42 = arith.addf %41, %40 : vector<8x32xf32>
    %43 = arith.divf %41, %42 : vector<8x32xf32>
    %44 = vector.extract_strided_slice %37 {offsets = [0, 32], sizes = [8, 32], strides = [1, 1]} : vector<8x128xf32> to vector<8x32xf32>
    %45 = arith.negf %44 : vector<8x32xf32>
    %46 = math.exp %45 : vector<8x32xf32>
    %cst_16 = arith.constant 1.000000e+00 : f32
    %47 = vector.broadcast %cst_16 : f32 to vector<8x32xf32>
    %48 = arith.addf %47, %46 : vector<8x32xf32>
    %49 = arith.divf %47, %48 : vector<8x32xf32>
    %50 = vector.extract_strided_slice %37 {offsets = [0, 64], sizes = [8, 32], strides = [1, 1]} : vector<8x128xf32> to vector<8x32xf32>
    %51 = math.tanh %50 : vector<8x32xf32>
    %52 = vector.extract_strided_slice %37 {offsets = [0, 96], sizes = [8, 32], strides = [1, 1]} : vector<8x128xf32> to vector<8x32xf32>
    %53 = arith.negf %52 : vector<8x32xf32>
    %54 = math.exp %53 : vector<8x32xf32>
    %cst_17 = arith.constant 1.000000e+00 : f32
    %55 = vector.broadcast %cst_17 : f32 to vector<8x32xf32>
    %56 = arith.addf %55, %54 : vector<8x32xf32>
    %57 = arith.divf %55, %56 : vector<8x32xf32>
    %58 = arith.mulf %49, %6 : vector<8x32xf32>
    %59 = arith.mulf %43, %51 : vector<8x32xf32>
    %60 = arith.addf %58, %59 : vector<8x32xf32>
    %61 = math.tanh %60 : vector<8x32xf32>
    %62 = arith.mulf %57, %61 : vector<8x32xf32>
    %63 = arith.index_cast %c0_i32_8 : i32 to index
    %c0_18 = arith.constant 0 : index
    %c0_19 = arith.constant 0 : index
    %64 = vector.load %arg7[%63, %c0_18, %c0_19] : memref<4x8x32xf32, #tpu.memory_space<vmem>>, vector<1x8x32xf32>
    %65 = vector.shape_cast %64 : vector<1x8x32xf32> to vector<8x32xf32>
    %66 = vector.shape_cast %62 : vector<8x32xf32> to vector<1x8x32xf32>
    tpu.vector_store %arg7[%63, %c0_18, %c0_19], %66 {strides = array<i32>} : memref<4x8x32xf32, #tpu.memory_space<vmem>>, vector<1x8x32xf32>,
    %c1_i32 = arith.constant 1 : i32
    %67 = arith.truncf %62 : vector<8x32xf32> to vector<8x32xbf16>
    %cst_20 = arith.constant dense<0.000000e+00> : vector<8x32xf32>
    %68 = tpu.matmul %67, %4, %cst_20 {dimension_numbers = #tpu.dot_dimension_numbers<[1], [0], [0], [1], [0, 0, 1, 1], [], []>} : vector<8x32xbf16>, vector<32x32xbf16>, vector<8x32xf32> -> vector<8x32xf32>
    %69 = math.cos %68 : vector<8x32xf32>
    %70 = math.sin %68 : vector<8x32xf32>
    %71 = vector.extract_strided_slice %69 {offsets = [0, 0], sizes = [8, 16], strides = [1, 1]} : vector<8x32xf32> to vector<8x16xf32>
    %72 = vector.extract_strided_slice %69 {offsets = [0, 16], sizes = [8, 16], strides = [1, 1]} : vector<8x32xf32> to vector<8x16xf32>
    %73 = arith.addf %71, %72 : vector<8x16xf32>
    %74 = vector.extract_strided_slice %70 {offsets = [0, 0], sizes = [8, 16], strides = [1, 1]} : vector<8x32xf32> to vector<8x16xf32>
    %75 = vector.extract_strided_slice %70 {offsets = [0, 16], sizes = [8, 16], strides = [1, 1]} : vector<8x32xf32> to vector<8x16xf32>
    %76 = arith.addf %74, %75 : vector<8x16xf32>
    %77 = tpu.concatenate %73, %76 in 1 : vector<8x16xf32>, vector<8x16xf32> -> vector<8x32xf32>
    %78 = arith.negf %68 : vector<8x32xf32>
    %79 = math.exp %78 : vector<8x32xf32>
    %cst_21 = arith.constant 1.000000e+00 : f32
    %80 = vector.broadcast %cst_21 : f32 to vector<8x32xf32>
    %81 = arith.addf %80, %79 : vector<8x32xf32>
    %82 = arith.divf %80, %81 : vector<8x32xf32>
    %83 = math.tanh %68 : vector<8x32xf32>
    %84 = arith.addf %82, %83 : vector<8x32xf32>
    %cst_22 = arith.constant 0.000000e+00 : f32
    %85 = vector.broadcast %cst_22 : f32 to vector<8x32xf32>
    %86 = arith.maximumf %68, %85 : vector<8x32xf32>
    %87 = arith.addf %84, %86 : vector<8x32xf32>
    %88 = arith.addf %87, %77 : vector<8x32xf32>
    %cst_23 = arith.constant 0.0883883461 : f32
    %89 = vector.broadcast %cst_23 : f32 to vector<8x32xf32>
    %90 = arith.mulf %88, %89 : vector<8x32xf32>
    %91 = arith.index_cast %c1_i32 : i32 to index
    %c0_24 = arith.constant 0 : index
    %c0_25 = arith.constant 0 : index
    %92 = vector.load %arg2[%91, %c0_24, %c0_25] : memref<4x8x128xbf16, #tpu.memory_space<vmem>>, vector<1x8x128xbf16>
    %93 = vector.shape_cast %92 : vector<1x8x128xbf16> to vector<8x128xbf16>
    %94 = arith.extf %93 : vector<8x128xbf16> to vector<8x128xf32>
    %95 = arith.truncf %90 : vector<8x32xf32> to vector<8x32xbf16>
    %cst_26 = arith.constant dense<0.000000e+00> : vector<8x128xf32>
    %96 = tpu.matmul %95, %3, %cst_26 {dimension_numbers = #tpu.dot_dimension_numbers<[1], [0], [0], [1], [0, 0, 1, 1], [], []>} : vector<8x32xbf16>, vector<32x128xbf16>, vector<8x128xf32> -> vector<8x128xf32>
    %97 = arith.addf %94, %96 : vector<8x128xf32>
    %98 = vector.extract_strided_slice %97 {offsets = [0, 0], sizes = [8, 32], strides = [1, 1]} : vector<8x128xf32> to vector<8x32xf32>
    %99 = arith.negf %98 : vector<8x32xf32>
    %100 = math.exp %99 : vector<8x32xf32>
    %cst_27 = arith.constant 1.000000e+00 : f32
    %101 = vector.broadcast %cst_27 : f32 to vector<8x32xf32>
    %102 = arith.addf %101, %100 : vector<8x32xf32>
    %103 = arith.divf %101, %102 : vector<8x32xf32>
    %104 = vector.extract_strided_slice %97 {offsets = [0, 32], sizes = [8, 32], strides = [1, 1]} : vector<8x128xf32> to vector<8x32xf32>
    %105 = arith.negf %104 : vector<8x32xf32>
    %106 = math.exp %105 : vector<8x32xf32>
    %cst_28 = arith.constant 1.000000e+00 : f32
    %107 = vector.broadcast %cst_28 : f32 to vector<8x32xf32>
    %108 = arith.addf %107, %106 : vector<8x32xf32>
    %109 = arith.divf %107, %108 : vector<8x32xf32>
    %110 = vector.extract_strided_slice %97 {offsets = [0, 64], sizes = [8, 32], strides = [1, 1]} : vector<8x128xf32> to vector<8x32xf32>
    %111 = math.tanh %110 : vector<8x32xf32>
    %112 = vector.extract_strided_slice %97 {offsets = [0, 96], sizes = [8, 32], strides = [1, 1]} : vector<8x128xf32> to vector<8x32xf32>
    %113 = arith.negf %112 : vector<8x32xf32>
    %114 = math.exp %113 : vector<8x32xf32>
    %cst_29 = arith.constant 1.000000e+00 : f32
    %115 = vector.broadcast %cst_29 : f32 to vector<8x32xf32>
    %116 = arith.addf %115, %114 : vector<8x32xf32>
    %117 = arith.divf %115, %116 : vector<8x32xf32>
    %118 = arith.mulf %109, %60 : vector<8x32xf32>
    %119 = arith.mulf %103, %111 : vector<8x32xf32>
    %120 = arith.addf %118, %119 : vector<8x32xf32>
    %121 = math.tanh %120 : vector<8x32xf32>
    %122 = arith.mulf %117, %121 : vector<8x32xf32>
    %123 = arith.index_cast %c1_i32 : i32 to index
    %c0_30 = arith.constant 0 : index
    %c0_31 = arith.constant 0 : index
    %124 = vector.load %arg7[%123, %c0_30, %c0_31] : memref<4x8x32xf32, #tpu.memory_space<vmem>>, vector<1x8x32xf32>
    %125 = vector.shape_cast %124 : vector<1x8x32xf32> to vector<8x32xf32>
    %126 = vector.shape_cast %122 : vector<8x32xf32> to vector<1x8x32xf32>
    tpu.vector_store %arg7[%123, %c0_30, %c0_31], %126 {strides = array<i32>} : memref<4x8x32xf32, #tpu.memory_space<vmem>>, vector<1x8x32xf32>,
    %c2_i32 = arith.constant 2 : i32
    %127 = arith.truncf %122 : vector<8x32xf32> to vector<8x32xbf16>
    %cst_32 = arith.constant dense<0.000000e+00> : vector<8x32xf32>
    %128 = tpu.matmul %127, %4, %cst_32 {dimension_numbers = #tpu.dot_dimension_numbers<[1], [0], [0], [1], [0, 0, 1, 1], [], []>} : vector<8x32xbf16>, vector<32x32xbf16>, vector<8x32xf32> -> vector<8x32xf32>
    %129 = math.cos %128 : vector<8x32xf32>
    %130 = math.sin %128 : vector<8x32xf32>
    %131 = vector.extract_strided_slice %129 {offsets = [0, 0], sizes = [8, 16], strides = [1, 1]} : vector<8x32xf32> to vector<8x16xf32>
    %132 = vector.extract_strided_slice %129 {offsets = [0, 16], sizes = [8, 16], strides = [1, 1]} : vector<8x32xf32> to vector<8x16xf32>
    %133 = arith.addf %131, %132 : vector<8x16xf32>
    %134 = vector.extract_strided_slice %130 {offsets = [0, 0], sizes = [8, 16], strides = [1, 1]} : vector<8x32xf32> to vector<8x16xf32>
    %135 = vector.extract_strided_slice %130 {offsets = [0, 16], sizes = [8, 16], strides = [1, 1]} : vector<8x32xf32> to vector<8x16xf32>
    %136 = arith.addf %134, %135 : vector<8x16xf32>
    %137 = tpu.concatenate %133, %136 in 1 : vector<8x16xf32>, vector<8x16xf32> -> vector<8x32xf32>
    %138 = arith.negf %128 : vector<8x32xf32>
    %139 = math.exp %138 : vector<8x32xf32>
    %cst_33 = arith.constant 1.000000e+00 : f32
    %140 = vector.broadcast %cst_33 : f32 to vector<8x32xf32>
    %141 = arith.addf %140, %139 : vector<8x32xf32>
    %142 = arith.divf %140, %141 : vector<8x32xf32>
    %143 = math.tanh %128 : vector<8x32xf32>
    %144 = arith.addf %142, %143 : vector<8x32xf32>
    %cst_34 = arith.constant 0.000000e+00 : f32
    %145 = vector.broadcast %cst_34 : f32 to vector<8x32xf32>
    %146 = arith.maximumf %128, %145 : vector<8x32xf32>
    %147 = arith.addf %144, %146 : vector<8x32xf32>
    %148 = arith.addf %147, %137 : vector<8x32xf32>
    %cst_35 = arith.constant 0.0883883461 : f32
    %149 = vector.broadcast %cst_35 : f32 to vector<8x32xf32>
    %150 = arith.mulf %148, %149 : vector<8x32xf32>
    %151 = arith.index_cast %c2_i32 : i32 to index
    %c0_36 = arith.constant 0 : index
    %c0_37 = arith.constant 0 : index
    %152 = vector.load %arg2[%151, %c0_36, %c0_37] : memref<4x8x128xbf16, #tpu.memory_space<vmem>>, vector<1x8x128xbf16>
    %153 = vector.shape_cast %152 : vector<1x8x128xbf16> to vector<8x128xbf16>
    %154 = arith.extf %153 : vector<8x128xbf16> to vector<8x128xf32>
    %155 = arith.truncf %150 : vector<8x32xf32> to vector<8x32xbf16>
    %cst_38 = arith.constant dense<0.000000e+00> : vector<8x128xf32>
    %156 = tpu.matmul %155, %3, %cst_38 {dimension_numbers = #tpu.dot_dimension_numbers<[1], [0], [0], [1], [0, 0, 1, 1], [], []>} : vector<8x32xbf16>, vector<32x128xbf16>, vector<8x128xf32> -> vector<8x128xf32>
    %157 = arith.addf %154, %156 : vector<8x128xf32>
    %158 = vector.extract_strided_slice %157 {offsets = [0, 0], sizes = [8, 32], strides = [1, 1]} : vector<8x128xf32> to vector<8x32xf32>
    %159 = arith.negf %158 : vector<8x32xf32>
    %160 = math.exp %159 : vector<8x32xf32>
    %cst_39 = arith.constant 1.000000e+00 : f32
    %161 = vector.broadcast %cst_39 : f32 to vector<8x32xf32>
    %162 = arith.addf %161, %160 : vector<8x32xf32>
    %163 = arith.divf %161, %162 : vector<8x32xf32>
    %164 = vector.extract_strided_slice %157 {offsets = [0, 32], sizes = [8, 32], strides = [1, 1]} : vector<8x128xf32> to vector<8x32xf32>
    %165 = arith.negf %164 : vector<8x32xf32>
    %166 = math.exp %165 : vector<8x32xf32>
    %cst_40 = arith.constant 1.000000e+00 : f32
    %167 = vector.broadcast %cst_40 : f32 to vector<8x32xf32>
    %168 = arith.addf %167, %166 : vector<8x32xf32>
    %169 = arith.divf %167, %168 : vector<8x32xf32>
    %170 = vector.extract_strided_slice %157 {offsets = [0, 64], sizes = [8, 32], strides = [1, 1]} : vector<8x128xf32> to vector<8x32xf32>
    %171 = math.tanh %170 : vector<8x32xf32>
    %172 = vector.extract_strided_slice %157 {offsets = [0, 96], sizes = [8, 32], strides = [1, 1]} : vector<8x128xf32> to vector<8x32xf32>
    %173 = arith.negf %172 : vector<8x32xf32>
    %174 = math.exp %173 : vector<8x32xf32>
    %cst_41 = arith.constant 1.000000e+00 : f32
    %175 = vector.broadcast %cst_41 : f32 to vector<8x32xf32>
    %176 = arith.addf %175, %174 : vector<8x32xf32>
    %177 = arith.divf %175, %176 : vector<8x32xf32>
    %178 = arith.mulf %169, %120 : vector<8x32xf32>
    %179 = arith.mulf %163, %171 : vector<8x32xf32>
    %180 = arith.addf %178, %179 : vector<8x32xf32>
    %181 = math.tanh %180 : vector<8x32xf32>
    %182 = arith.mulf %177, %181 : vector<8x32xf32>
    %183 = arith.index_cast %c2_i32 : i32 to index
    %c0_42 = arith.constant 0 : index
    %c0_43 = arith.constant 0 : index
    %184 = vector.load %arg7[%183, %c0_42, %c0_43] : memref<4x8x32xf32, #tpu.memory_space<vmem>>, vector<1x8x32xf32>
    %185 = vector.shape_cast %184 : vector<1x8x32xf32> to vector<8x32xf32>
    %186 = vector.shape_cast %182 : vector<8x32xf32> to vector<1x8x32xf32>
    tpu.vector_store %arg7[%183, %c0_42, %c0_43], %186 {strides = array<i32>} : memref<4x8x32xf32, #tpu.memory_space<vmem>>, vector<1x8x32xf32>,
    %c3_i32 = arith.constant 3 : i32
    %187 = arith.truncf %182 : vector<8x32xf32> to vector<8x32xbf16>
    %cst_44 = arith.constant dense<0.000000e+00> : vector<8x32xf32>
    %188 = tpu.matmul %187, %4, %cst_44 {dimension_numbers = #tpu.dot_dimension_numbers<[1], [0], [0], [1], [0, 0, 1, 1], [], []>} : vector<8x32xbf16>, vector<32x32xbf16>, vector<8x32xf32> -> vector<8x32xf32>
    %189 = math.cos %188 : vector<8x32xf32>
    %190 = math.sin %188 : vector<8x32xf32>
    %191 = vector.extract_strided_slice %189 {offsets = [0, 0], sizes = [8, 16], strides = [1, 1]} : vector<8x32xf32> to vector<8x16xf32>
    %192 = vector.extract_strided_slice %189 {offsets = [0, 16], sizes = [8, 16], strides = [1, 1]} : vector<8x32xf32> to vector<8x16xf32>
    %193 = arith.addf %191, %192 : vector<8x16xf32>
    %194 = vector.extract_strided_slice %190 {offsets = [0, 0], sizes = [8, 16], strides = [1, 1]} : vector<8x32xf32> to vector<8x16xf32>
    %195 = vector.extract_strided_slice %190 {offsets = [0, 16], sizes = [8, 16], strides = [1, 1]} : vector<8x32xf32> to vector<8x16xf32>
    %196 = arith.addf %194, %195 : vector<8x16xf32>
    %197 = tpu.concatenate %193, %196 in 1 : vector<8x16xf32>, vector<8x16xf32> -> vector<8x32xf32>
    %198 = arith.negf %188 : vector<8x32xf32>
    %199 = math.exp %198 : vector<8x32xf32>
    %cst_45 = arith.constant 1.000000e+00 : f32
    %200 = vector.broadcast %cst_45 : f32 to vector<8x32xf32>
    %201 = arith.addf %200, %199 : vector<8x32xf32>
    %202 = arith.divf %200, %201 : vector<8x32xf32>
    %203 = math.tanh %188 : vector<8x32xf32>
    %204 = arith.addf %202, %203 : vector<8x32xf32>
    %cst_46 = arith.constant 0.000000e+00 : f32
    %205 = vector.broadcast %cst_46 : f32 to vector<8x32xf32>
    %206 = arith.maximumf %188, %205 : vector<8x32xf32>
    %207 = arith.addf %204, %206 : vector<8x32xf32>
    %208 = arith.addf %207, %197 : vector<8x32xf32>
    %cst_47 = arith.constant 0.0883883461 : f32
    %209 = vector.broadcast %cst_47 : f32 to vector<8x32xf32>
    %210 = arith.mulf %208, %209 : vector<8x32xf32>
    %211 = arith.index_cast %c3_i32 : i32 to index
    %c0_48 = arith.constant 0 : index
    %c0_49 = arith.constant 0 : index
    %212 = vector.load %arg2[%211, %c0_48, %c0_49] : memref<4x8x128xbf16, #tpu.memory_space<vmem>>, vector<1x8x128xbf16>
    %213 = vector.shape_cast %212 : vector<1x8x128xbf16> to vector<8x128xbf16>
    %214 = arith.extf %213 : vector<8x128xbf16> to vector<8x128xf32>
    %215 = arith.truncf %210 : vector<8x32xf32> to vector<8x32xbf16>
    %cst_50 = arith.constant dense<0.000000e+00> : vector<8x128xf32>
    %216 = tpu.matmul %215, %3, %cst_50 {dimension_numbers = #tpu.dot_dimension_numbers<[1], [0], [0], [1], [0, 0, 1, 1], [], []>} : vector<8x32xbf16>, vector<32x128xbf16>, vector<8x128xf32> -> vector<8x128xf32>
    %217 = arith.addf %214, %216 : vector<8x128xf32>
    %218 = vector.extract_strided_slice %217 {offsets = [0, 0], sizes = [8, 32], strides = [1, 1]} : vector<8x128xf32> to vector<8x32xf32>
    %219 = arith.negf %218 : vector<8x32xf32>
    %220 = math.exp %219 : vector<8x32xf32>
    %cst_51 = arith.constant 1.000000e+00 : f32
    %221 = vector.broadcast %cst_51 : f32 to vector<8x32xf32>
    %222 = arith.addf %221, %220 : vector<8x32xf32>
    %223 = arith.divf %221, %222 : vector<8x32xf32>
    %224 = vector.extract_strided_slice %217 {offsets = [0, 32], sizes = [8, 32], strides = [1, 1]} : vector<8x128xf32> to vector<8x32xf32>
    %225 = arith.negf %224 : vector<8x32xf32>
    %226 = math.exp %225 : vector<8x32xf32>
    %cst_52 = arith.constant 1.000000e+00 : f32
    %227 = vector.broadcast %cst_52 : f32 to vector<8x32xf32>
    %228 = arith.addf %227, %226 : vector<8x32xf32>
    %229 = arith.divf %227, %228 : vector<8x32xf32>
    %230 = vector.extract_strided_slice %217 {offsets = [0, 64], sizes = [8, 32], strides = [1, 1]} : vector<8x128xf32> to vector<8x32xf32>
    %231 = math.tanh %230 : vector<8x32xf32>
    %232 = vector.extract_strided_slice %217 {offsets = [0, 96], sizes = [8, 32], strides = [1, 1]} : vector<8x128xf32> to vector<8x32xf32>
    %233 = arith.negf %232 : vector<8x32xf32>
    %234 = math.exp %233 : vector<8x32xf32>
    %cst_53 = arith.constant 1.000000e+00 : f32
    %235 = vector.broadcast %cst_53 : f32 to vector<8x32xf32>
    %236 = arith.addf %235, %234 : vector<8x32xf32>
    %237 = arith.divf %235, %236 : vector<8x32xf32>
    %238 = arith.mulf %229, %180 : vector<8x32xf32>
    %239 = arith.mulf %223, %231 : vector<8x32xf32>
    %240 = arith.addf %238, %239 : vector<8x32xf32>
    %241 = math.tanh %240 : vector<8x32xf32>
    %242 = arith.mulf %237, %241 : vector<8x32xf32>
    %243 = arith.index_cast %c3_i32 : i32 to index
    %c0_54 = arith.constant 0 : index
    %c0_55 = arith.constant 0 : index
    %244 = vector.load %arg7[%243, %c0_54, %c0_55] : memref<4x8x32xf32, #tpu.memory_space<vmem>>, vector<1x8x32xf32>
    %245 = vector.shape_cast %244 : vector<1x8x32xf32> to vector<8x32xf32>
    %246 = vector.shape_cast %242 : vector<8x32xf32> to vector<1x8x32xf32>
    tpu.vector_store %arg7[%243, %c0_54, %c0_55], %246 {strides = array<i32>} : memref<4x8x32xf32, #tpu.memory_space<vmem>>, vector<1x8x32xf32>,
    %c4_i32 = arith.constant 4 : i32
    %c0_56 = arith.constant 0 : index
    %c0_57 = arith.constant 0 : index
    %247 = vector.load %arg10[%c0_56, %c0_57] : memref<8x32xf32, #tpu.memory_space<vmem>>, vector<8x32xf32>
    tpu.vector_store %arg10[%c0_56, %c0_57], %242 {strides = array<i32>} : memref<8x32xf32, #tpu.memory_space<vmem>>, vector<8x32xf32>,
    %c0_58 = arith.constant 0 : index
    %c0_59 = arith.constant 0 : index
    %248 = vector.load %arg11[%c0_58, %c0_59] : memref<8x32xf32, #tpu.memory_space<vmem>>, vector<8x32xf32>
    tpu.vector_store %arg11[%c0_58, %c0_59], %240 {strides = array<i32>} : memref<8x32xf32, #tpu.memory_space<vmem>>, vector<8x32xf32>,
    %c1_i32_60 = arith.constant 1 : i32
    %249 = arith.cmpi eq, %arg1, %c1_i32_60 : i32
    %250 = arith.extui %249 : i1 to i32
    %c0_i32_61 = arith.constant 0 : i32
    %251 = arith.cmpi ne, %250, %c0_i32_61 : i32
    scf.if %251 {
      %c0_62 = arith.constant 0 : index
      %c0_63 = arith.constant 0 : index
      %252 = vector.load %arg8[%c0_62, %c0_63] : memref<8x32xf32, #tpu.memory_space<vmem>>, vector<8x32xf32>
      tpu.vector_store %arg8[%c0_62, %c0_63], %242 {strides = array<i32>} : memref<8x32xf32, #tpu.memory_space<vmem>>, vector<8x32xf32>,
      %c0_64 = arith.constant 0 : index
      %c0_65 = arith.constant 0 : index
      %253 = vector.load %arg9[%c0_64, %c0_65] : memref<8x32xf32, #tpu.memory_space<vmem>>, vector<8x32xf32>
      tpu.vector_store %arg9[%c0_64, %c0_65], %240 {strides = array<i32>} : memref<8x32xf32, #tpu.memory_space<vmem>>, vector<8x32xf32>,
    } else {
    }
    return
  }
  func.func @transform_0(%arg0: i32, %arg1: i32) -> (i32, i32, i32) {
    %c0_i32 = arith.constant 0 : i32
    %c0_i32_0 = arith.constant 0 : i32
    return %arg1, %arg0, %c0_i32 : i32, i32, i32
  }
  func.func @transform_1(%arg0: i32, %arg1: i32) -> (i32, i32) {
    %c0_i32 = arith.constant 0 : i32
    %c0_i32_0 = arith.constant 0 : i32
    %c0_i32_1 = arith.constant 0 : i32
    return %c0_i32, %c0_i32_0 : i32, i32
  }
  func.func @transform_2(%arg0: i32, %arg1: i32) -> (i32, i32) {
    %c0_i32 = arith.constant 0 : i32
    %c0_i32_0 = arith.constant 0 : i32
    %c0_i32_1 = arith.constant 0 : i32
    return %c0_i32, %c0_i32_0 : i32, i32
  }
  func.func @transform_3(%arg0: i32, %arg1: i32) -> (i32, i32) {
    %c0_i32 = arith.constant 0 : i32
    %c0_i32_0 = arith.constant 0 : i32
    return %arg0, %c0_i32 : i32, i32
  }
  func.func @transform_4(%arg0: i32, %arg1: i32) -> (i32, i32) {
    %c0_i32 = arith.constant 0 : i32
    %c0_i32_0 = arith.constant 0 : i32
    return %arg0, %c0_i32 : i32, i32
  }
  func.func @transform_5(%arg0: i32, %arg1: i32) -> (i32, i32, i32) {
    %c0_i32 = arith.constant 0 : i32
    %c0_i32_0 = arith.constant 0 : i32
    return %arg1, %arg0, %c0_i32 : i32, i32, i32
  }
  func.func @transform_6(%arg0: i32, %arg1: i32) -> (i32, i32) {
    %c0_i32 = arith.constant 0 : i32
    %c0_i32_0 = arith.constant 0 : i32
    return %arg0, %c0_i32 : i32, i32
  }
  func.func @transform_7(%arg0: i32, %arg1: i32) -> (i32, i32) {
    %c0_i32 = arith.constant 0 : i32
    %c0_i32_0 = arith.constant 0 : i32
    return %arg0, %c0_i32 : i32, i32
  }
}

</mosaic_0001>

<bundles_post_ra>
// kernel: tpu_custom_call.1
= control target key start
LH: loop header
LB: loop body
LE: loop exit
PB: predicated region body
PF: predicated region fallthrough
CT: control target
= control target key end

     0   :  { %s3425_s0 = inlined_call_operand.hbm [shape: bf16[8,8,128], index: 0, kind: input, shape index: {}]   ;;  %s3426_s1 = inlined_call_operand.hbm [shape: bf16[32,128], index: 1, kind: input, shape index: {}]   ;;  %s3427_s2 = inlined_call_operand.hbm [shape: bf16[32,32], index: 2, kind: input, shape index: {}]   ;;  %s3428_s3 = inlined_call_operand.vmem [shape: f32[8,32], index: 3, kind: input, shape index: {}]   ;;  %s3429_s4 = inlined_call_operand.hbm [shape: f32[8,32], index: 4, kind: input, shape index: {}]   ;;  %s3430_s5 = inlined_call_operand.hbm [shape: f32[8,8,32], index: 5, kind: output, shape index: {0}]   ;;  %s3431_s6 = inlined_call_operand.hbm [shape: f32[8,32], index: 6, kind: output, shape index: {1}]   ;;  %s3432_s7 = inlined_call_operand.hbm [shape: f32[8,32], index: 7, kind: output, shape index: {2}]  }
   0x1   :  { %3442 = sst [smem:[#allocation23_spill]] %s3430_s5 }
   0x2   :  { %3443 = sst [smem:[#allocation24_spill]] %s3432_s7 }
   0x3   :  { %13 = vsyncpa [#allocation5], 0 }
   0x4   :  { %15 = vsyncpa [#allocation5 + $0x1], 0 }
   0x5   :  { %16 = vsyncpa [#allocation8], 0 }
   0x6   :  { %17 = vsyncpa [#allocation11], 0 }
   0x7   :  { %18 = vsyncpa [#allocation6], 0 }
   0x8   :  { %20 = vsyncpa [#allocation6 + $0x1], 0 }
   0x9   :  { %21 = vsyncpa [#allocation14], 0  ;;  %s2796_s24 = smov 0   ;;  %s2798_s25 = smov 0  }
   0xa   :  { %s2800_s26 = smov 0   ;;  %s2802_s27 = smov 0  }
   0xb   :  { %s2804_s28 = smov 0   ;;  %s2806_s29 = smov 0  }
   0xc LB: > { %3444 = sst [smem:[#allocation21_spill]] %s2710_s24  ;;  %s2078_s30 = sadd.s32 4294967295, %s2730_s29   ;;  %s2730_s29 = sphi %s2806_s29, %s27_s29   ;;  %s2726_s28 = sphi %s2804_s28, %s3470_s28   ;;  %s2722_s27 = sphi %s2802_s27, %s3469_s27   ;;  %s2718_s26 = sphi %s2800_s26, %s3468_s26   ;;  %s2714_s25 = sphi %s2798_s25, %s3467_s25   ;;  %s2710_s24 = sphi %s2796_s24, %s3466_s24  }
   0xd   : > { %s2079_s8 = sadd.s32 4294967294, %s2730_s29   ;;  %p61_p0 = scmp.ne.s32.totalorder %s2714_s25, %s2710_s24 }
   0xe   : > { %p2830_p1 = scmp.eq.s32.totalorder %s2078_s30, 0  ;;  %p2834_p2 = scmp.eq.s32.totalorder %s2078_s30, 1 }
   0xf   : > { %p187_p3 = scmp.eq.s32.totalorder %s2079_s8, 1  ;;  %p2080_p5 = scmp.ge.s32.totalorder %s2730_s29, 1 }
  0x10   : > { %s3445_s9 = scalar_select %p2830_p1, 1, 0 }
  0x11   : > { %s3446_s10 = scalar_select %p2834_p2, 1, 0 }
  0x12   : > { %p2840_p4 = por %p2830_p1, %p61_p0  ;;  %p2845_p6 = por %p187_p3, %p61_p0 }
  0x13   : > { %p246_p7 = scmp.lt.s32.totalorder %s2730_s29, 3  ;;  %s2732_s14 = smov [#allocation7]  }
  0x14   : > { %s3447_s11 = scalar_select %p2840_p4, 1, 0 }
  0x15   : > { %s3448_s12 = scalar_select %p2845_p6, 1, 0 }
  0x16   : > { %p2850_p8 = pnand %p2080_p5, %p246_p7  ;;  %s258_s15 = sshll.u32 %s2732_s14, 4  ;;  %s2854_s15 = int_to_ptr.vmem [resolvable:$true] %s258_s15 }
  0x17   : > { %3449 = sst [smem:[#allocation22_spill]] %s3448_s12  ;;  %s2733_s17 = smov [#allocation9]  }
  0x18   : > { %s3450_s13 = scalar_select %p2850_p8, 1, 0 }
  0x19   : > { %p2294_p9 = pneg %p2850_p8  ;;  %s271_s18 = sshll.u32 %s2733_s17, 4  ;;  %s2865_s18 = int_to_ptr.vmem [resolvable:$true] %s271_s18 }
  0x1a   : > { %s2734_s19 = smov [#allocation10]   ;;  %s2470_s23 = scalar_lea.hbm %s3426_s1, 256 }
  0x1b   : > { %p2861_p11 = pnand %p2294_p9, %p2830_p1  ;;  %s2867_s20 = sshll.u32 %s2734_s19, 4  ;;  %s295_s20 = int_to_ptr.vmem [resolvable:$true] %s2867_s20 }
  0x1c   : > { %p2471_p12 = scmp.ne.s32.totalorder %s3426_s1, %s2470_s23  ;;  %p2477_p5 = scmp.lt.u32.totalorder %s2470_s23, %s3426_s1 }
  0x1d   : > { %p2877_p13 = pneg %p2861_p11 }
  0x1f   : > { %p2473_p0 = pnand %p2877_p13, %p2471_p12 }
  0x21   : > { %p2474_p3 = pneg %p2473_p0 }
  0x23   : > { %p2479_p7 = pnand %p2477_p5, %p2474_p3 }
  0x25   : > { %2482 = shalt.err (!%p2479_p7)
}
  0x26   : > { %s2483_s21 = scalar_lea.vmem %s2854_s15, 256  ;;  %p2491_p1 = scmp.lt.s32.totalorder %s2854_s15, %s2854_s15 }
  0x27   : > { %p2484_p9 = scmp.ne.s32.totalorder %s2854_s15, %s2483_s21  ;;  %p2492_p4 = scmp.lt.s32.totalorder %s2483_s21, %s2483_s21 }
  0x29   : > { %p2486_p10 = pnand %p2484_p9, %p2877_p13  ;;  %p2493_p12 = por %p2492_p4, %p2491_p1 }
  0x2b   : > { %p2487_p6 = pneg %p2486_p10 }
  0x2d   : > { %p2494_p0 = pnand %p2493_p12, %p2487_p6 }
  0x2f   : > { %2497 = shalt.err (!%p2494_p0)
}
  0x30   : > { %s2735_s22 = smov 64   ;;  %s2736_s23 = smov 4  }
  0x31   : > { %2297 = dma.hbm_to_vmem [thread:$0]  (!%p2861_p11), %s3426_s1, 256, %s2854_s15, [#allocation8], %s2735_s22, %s2735_s22, %s2736_s23  }
  0x32   : > { %s2498_s21 = scalar_lea.hbm %s3427_s2, 256 }
  0x33   : > { %p2499_p1 = scmp.ne.s32.totalorder %s3427_s2, %s2498_s21  ;;  %p2505_p10 = scmp.lt.u32.totalorder %s2498_s21, %s3427_s2 }
  0x35   : > { %p2501_p4 = pnand %p2499_p1, %p2877_p13 }
  0x37   : > { %p2502_p6 = pneg %p2501_p4 }
  0x39   : > { %p2507_p3 = pnand %p2505_p10, %p2502_p6 }
  0x3b   : > { %2510 = shalt.err (!%p2507_p3)
}
  0x3c   : > { %s2511_s15 = scalar_lea.vmem %s2865_s18, 256  ;;  %p2519_p12 = scmp.lt.s32.totalorder %s2865_s18, %s2865_s18 }
  0x3d   : > { %p2512_p5 = scmp.ne.s32.totalorder %s2865_s18, %s2511_s15  ;;  %p2520_p0 = scmp.lt.s32.totalorder %s2511_s15, %s2511_s15 }
  0x3f   : > { %p2514_p7 = pnand %p2512_p5, %p2877_p13  ;;  %p2521_p1 = por %p2520_p0, %p2519_p12 }
  0x41   : > { %p2515_p9 = pneg %p2514_p7 }
  0x43   : > { %p2522_p4 = pnand %p2521_p1, %p2515_p9 }
  0x45   : > { %2525 = shalt.err (!%p2522_p4)
}
  0x46   : > { %2300 = dma.hbm_to_vmem [thread:$0]  (!%p2861_p11), %s3427_s2, 256, %s2865_s18, [#allocation8], %s2735_s22, %s2735_s22, %s2736_s23  }
  0x47   : > { %s2526_s30 = scalar_lea.hbm %s3429_s4, 128 }
  0x48   : > { %p2527_p6 = scmp.ne.s32.totalorder %s3429_s4, %s2526_s30  ;;  %p2533_p5 = scmp.lt.u32.totalorder %s2526_s30, %s3429_s4 }
  0x4a   : > { %p2529_p10 = pnand %p2527_p6, %p2877_p13 }
  0x4c   : > { %p2530_p3 = pneg %p2529_p10 }
  0x4e   : > { %p2535_p7 = pnand %p2533_p5, %p2530_p3 }
  0x50   : > { %2538 = shalt.err (!%p2535_p7)
}
  0x51   : > { %s2539_s15 = scalar_lea.vmem %s295_s20, 128  ;;  %p2547_p1 = scmp.lt.s32.totalorder %s295_s20, %s295_s20 }
  0x52   : > { %p2540_p9 = scmp.ne.s32.totalorder %s295_s20, %s2539_s15  ;;  %p2548_p4 = scmp.lt.s32.totalorder %s2539_s15, %s2539_s15 }
  0x54   : > { %p2542_p12 = pnand %p2540_p9, %p2877_p13  ;;  %p2549_p8 = por %p2548_p4, %p2547_p1 }
  0x56   : > { %p2543_p0 = pneg %p2542_p12 }
  0x58   : > { %p2550_p2 = pnand %p2549_p8, %p2543_p0 }
  0x5a   : > { %2553 = shalt.err (!%p2550_p2)
}
  0x5b   : > { %2303 = dma.hbm_to_vmem [thread:$0]  (!%p2861_p11), %s3429_s4, 128, %s295_s20, [#allocation11]  }
  0x5c   : > { %s48_s14 = sadd.s32 1, %s2718_s26  ;;  %s36_s7 = sadd.s32 1, %s2726_s28 }
  0x5d   : > { %p55_p2 = scmp.ne.s32.totalorder %s2718_s26, %s2714_s25  ;;  %p37_p8 = scmp.ge.s32.totalorder %s36_s7, 2 }
  0x5e   : > { %p56_p13 = scmp.eq.s32.totalorder %s2730_s29, 0  ;;  %p3453_p6 = scmp.ne.s32.totalorder %s3446_s10, 0 }
  0x5f   : > { %p2315_p3 = scmp.lt.s32.totalorder %s2730_s29, 2  ;;  %s3472_s7 = smov (%p37_p8, %s36_s7), 0 }
  0x60   : > { %p2953_p10 = por %p3453_p6, %p55_p2  ;;  %p57_p5 = por %p56_p13, %p55_p2 }
  0x61   : > { %s305_s24 = sand.u32 1, %s2718_s26   ;;  %s43_s12 = ssub.s32 %s2726_s28, %s3472_s7 }
  0x62   : > { %p46_p7 = scmp.eq.s32.totalorder %s43_s12, 0  ;;  %s2086_s20 = sshll.u32 %s305_s24, 4 }
  0x63   : > { %s2164_s30 = sshll.u32 %s2726_s28, 8  ;;  %s309_s15 = scalar_lea.vmem [#allocation4], %s2086_s20 }
  0x64   : > { %s2965_s8 = scalar_select %p46_p7, %s2718_s26, %s48_s14  }
  0x65   : > { %s2970_s21 = scalar_lea.hbm %s3425_s0, %s2164_s30  ;;  %s317_s18 = sshll.u32 %s309_s15, 4  ;;  %s2972_s18 = int_to_ptr.vmem [resolvable:$true] %s317_s18 }
  0x66   : > { %p2976_p11 = pnand %p2315_p3, %p57_p5  ;;  %s2980_s14 = scalar_lea.sflag [#allocation5], %s305_s24 }
  0x67   : > { %s2554_s12 = scalar_lea.hbm %s2970_s21, 256  ;;  %s2559_s17 = scalar_lea.hbm %s3425_s0, 512 }
  0x68   : > { %p2555_p9 = scmp.ne.s32.totalorder %s2970_s21, %s2554_s12  ;;  %p2556_p12 = pneg %p2976_p11 }
  0x69   : > { %p2560_p4 = scmp.lt.u32.totalorder %s2970_s21, %s3425_s0  ;;  %p2561_p2 = scmp.lt.u32.totalorder %s2559_s17, %s2554_s12 }
  0x6a   : > { %p2557_p0 = pnand %p2556_p12, %p2555_p9  ;;  %p2563_p13 = scmp.lt.u32.totalorder %s2554_s12, %s2970_s21 }
  0x6b   : > { %p2562_p8 = por %p2561_p2, %p2560_p4 }
  0x6c   : > { %p2558_p1 = pneg %p2557_p0 }
  0x6d   : > { %p2564_p6 = por %p2563_p13, %p2562_p8 }
  0x6f   : > { %p2565_p3 = pnand %p2564_p6, %p2558_p1 }
  0x71   : > { %2568 = shalt.err (!%p2565_p3)
}
  0x72   : > { %s2569_s24 = scalar_lea.vmem %s2972_s18, 256  ;;  %s2737_s20 = smov [#allocation4]  }
  0x73   : > { %p2570_p5 = scmp.ne.s32.totalorder %s2972_s18, %s2569_s24  ;;  %s2574_s30 = sshll.u32 %s2737_s20, 4  ;;  %s2575_s30 = int_to_ptr.vmem [resolvable:$false] %s2574_s30 }
  0x74   : > { %s2576_s19 = scalar_lea.vmem %s2575_s30, 512  ;;  %p2577_p0 = scmp.lt.s32.totalorder %s2972_s18, %s2575_s30 }
  0x75   : > { %p2572_p7 = pnand %p2570_p5, %p2556_p12  ;;  %p2578_p4 = scmp.lt.s32.totalorder %s2576_s19, %s2569_s24 }
  0x77   : > { %p2573_p9 = pneg %p2572_p7  ;;  %p2579_p2 = por %p2578_p4, %p2577_p0 }
  0x79   : > { %p2580_p8 = pnand %p2579_p2, %p2573_p9 }
  0x7b   : > { %2583 = shalt.err (!%p2580_p8)
}
  0x7c   : > { %2307 = dma.hbm_to_vmem [thread:$0]  (!%p2976_p11), %s2970_s21, 256, %s2972_s18, %s2980_s14, %s2735_s22, %s2735_s22, %s2736_s23  }
  0x7d   : > { %p3456_p12 = scmp.ne.s32.totalorder %s3450_s13, 0 }
  0x7e   : > { %s3014_s12 = sand.u32 (!%p3456_p12), 1, %s2714_s25   ;;  %p3457_p1 = scmp.ne.s32.totalorder (!%p3456_p12), %s3447_s11, 0 }
  0x7f   : > { %329 = sbr.rel (%p3456_p12) target bundleno = 5173 (0x1435), region = 40  ;;  %s2090_s17 = sshll.u32 (!%p3456_p12), %s3014_s12, 4 }
  0x80   : > { %s332_s15 = scalar_lea.sflag (!%p3456_p12), [#allocation5], %s3014_s12  ;;  %s3018_s24 = scalar_lea.vmem (!%p3456_p12), [#allocation4], %s2090_s17 }
  0x86   : > { %2689 = dma.done.wait (%p3457_p1), %s332_s15, 256  }
  0x87   : > { %2691 = vsyncadd (%p3457_p1), %s332_s15, 4294967040  ;;  %p3458_p11 = scmp.ne.s32.totalorder %s3445_s9, 0 }
  0x89   : > { %2693 = dma.done.wait (%p3458_p11), [#allocation8], 512  }
  0x8a   : > { %2695 = vsyncadd (%p3458_p11), [#allocation8], 4294966784 }
  0x8b   : > { %2697 = dma.done.wait (%p3458_p11), [#allocation11], 128  }
  0x8c   : > { %2699 = vsyncadd (%p3458_p11), [#allocation11], 4294967168  ;;  %s2094_s13 = sshll.u32 %s3014_s12, 5  ;;  %p2095_p13 = scmp.ne.s32.totalorder %s2722_s27, 0 }
  0x8d   : > { %s3033_s22 = scalar_lea.vmem [#allocation12], %s2094_s13  ;;  %v393_v0 = vld [vmem:[%s3428_s3] sm:$0xff] (!%p2095_p13)  ;;  %vm394_vm0 = vcmask (!%p2095_p13), 261120   ;;  %v396_v1 = vld [vmem:[#allocation10] sm:$0xff] (!%p2095_p13) }
  0x8e   : > { %392 = sbr.rel (%p2095_p13) target bundleno = 149 (0x95), region = 60  ;;  %395 = vst.msk [vmem:[#allocation2] sm:$0xff] (!%p2095_p13), %vm394_vm0, %v393_v0  ;;  %397 = vst.msk [vmem:[#allocation3] sm:$0xff] (!%p2095_p13), %vm394_vm0, %v396_v1 }
  0x95 PF: > { %v3039_v2 = vld [vmem:[#allocation9] sm:$0xff]   ;;  %v2738_v3 = vmov 0.0   ;;  %v3042_v4 = vld [vmem:[#allocation9 + $0x8] sm:$0xff]   ;;  %vm2739_vm1 = vmmov 0   ;;  %vm421_vm2 = vcmask 261120   ;;  %s2746_s9 = smov 112  }
  0x96   : > { %2190 = vmatprep.subr.bf16.mxu0 %v2738_v3  ;;  %2198 = vmatprep.subr.bf16.mxu1 %v2738_v3  ;;  %v406_v5 = vld [vmem:[#allocation2] sm:$0xff]  ;;  %v2740_v21 = vmov 683565275   ;;  %v2741_v23 = vmov 2475754826   ;;  %s2747_s21 = smov 32  }
  0x97   : > { %2191 = vmatpush3.bf16.msra.mxu0 %v3039_v2  ;;  %2194 = vmatprep.mubr.msk.bf16.mxu0 %vm2739_vm1, %v2738_v3  ;;  %v408_v6 = vpack.c.bf16 %v406_v5, %v406_v5  ;;  %v2742_v26 = vmov 2131351028   ;;  %v2743_v29 = vmov 2102212464   ;;  %v2744_v32 = vmov 920167782  }
  0x98   : > { %2192 = vmatprep.subr.bf16.mxu0 %v2738_v3  ;;  %2202 = vmatprep.mubr.msk.bf16.mxu1 %vm2739_vm1, %v2738_v3  ;;  %v2745_v35 = vmov 1326507024   ;;  %s2748_s18 = smov 16   ;;  %s2749_s5 = smov 64  }
  0x99   : > { %s2750_s14 = smov 96   ;;  %p2154_p6 = scmp.ne.s32.totalorder %s2722_s27, 1 }
  0x9b   : > { %2193 = vmatpush3.bf16.msra.mxu0 %v3042_v4 }
  0x9c   : > { %2206 = vmatprep.subr.bf16.mxu0 %v2738_v3 }
  0x9e   : > { %2195 = vmatmul.mubr.msk.bf16.vlgmr.msra.gmra.mrb[0].mxu0 %vm421_vm2, %v408_v6 }
  0x9f   : > { %2207 = vmatpush3.bf16.msra.mxu0 %v3039_v2  ;;  %2210 = vmatprep.mubr.msk.bf16.mxu0 %vm2739_vm1, %v2738_v3 }
  0xa0   : > { %2208 = vmatprep.subr.bf16.mxu0 %v2738_v3 }
  0xa3   : > { %2209 = vmatpush3.bf16.msra.mxu0 %v3042_v4 }
  0xa4   : > { %2222 = vmatprep.subr.bf16.mxu0 %v2738_v3 }
 0x171   : > { %v3060_v7 = vpop.f32.mrb[0].mxu0 }
 0x172   : > { %v468_v8 = vand.u32 2139095040, %v3060_v7  ;;  %v2196_v9 = vpop.f32.mrb[1].mxu0  ;;  %v465_v15 = vand.u32 2147483647, %v3060_v7  ;;  %vm467_vm10 = vcmp.lt.s32.totalorder %v3060_v7, 0 }
 0x173   : > { %v462_v10 = vpop.f32.mrb[2].mxu0 }
 0x174   : > { %v469_v11 = vshrl.u32 %v468_v8, 23  ;;  %v2197_v12 = vpop.f32.mrb[3].mxu0  ;;  %v472_v19 = vand.u32 8388607, %v465_v15  ;;  %vm466_vm11 = vcmp.le.f32.partialorder %v465_v15, 0.7853982 }
 0x176   : > { %v2099_v13 = vadd.s32 4294967169, %v469_v11  ;;  %v473_v37 = vor.u32 8388608, %v472_v19 }
 0x178   : > { %v475_v14 = vadd.s32 1, %v2099_v13  ;;  %v513_v51 = vshll.u32 %v473_v37, 8 }
 0x17a   : > { %vm476_vm3 = vcmp.gt.s32.totalorder %v475_v14, 0 }
 0x17b   : > { %v477_v16 = vsel %vm476_vm3, %v475_v14, 0  ;;  %vm557_vm3 = vweird.f32 %v3060_v7 }
 0x17c   : > { %v479_v17 = vand.u32 31, %v477_v16  ;;  %v478_v20 = vshrl.u32 %v477_v16, 5 }
 0x17e   : > { %v480_v18 = vsub.s32 32, %v479_v17  ;;  %v482_v22 = vshll.u32 %v2740_v21, %v479_v17  ;;  %v485_v24 = vshll.u32 %v2741_v23, %v479_v17  ;;  %v488_v28 = vshll.u32 %v2742_v26, %v479_v17 }
 0x17f   : > { %v491_v31 = vshll.u32 %v2743_v29, %v479_v17  ;;  %v494_v34 = vshll.u32 %v2744_v32, %v479_v17  ;;  %vm497_vm4 = vcmp.lt.s32.totalorder %v478_v20, 1  ;;  %vm500_vm5 = vcmp.lt.s32.totalorder %v478_v20, 4 }
 0x180   : > { %v483_v25 = vshrl.u32 %v2741_v23, %v480_v18  ;;  %v486_v27 = vshrl.u32 %v2742_v26, %v480_v18  ;;  %v489_v30 = vshrl.u32 %v2743_v29, %v480_v18  ;;  %v492_v33 = vshrl.u32 %v2744_v32, %v480_v18 }
 0x181   : > { %v495_v36 = vshrl.u32 %v2745_v35, %v480_v18  ;;  %v481_v46 = vshrl.u32 %v2740_v21, %v480_v18  ;;  %vm499_vm6 = vcmp.lt.s32.totalorder %v478_v20, 3  ;;  %vm498_vm7 = vcmp.lt.s32.totalorder %v478_v20, 2 }
 0x182   : > { %v484_v38 = vor.u32 %v483_v25, %v482_v22  ;;  %v487_v39 = vor.u32 %v486_v27, %v485_v24  ;;  %v490_v40 = vor.u32 %v489_v30, %v488_v28  ;;  %v493_v41 = vor.u32 %v492_v33, %v491_v31 }
 0x183   : > { %v496_v42 = vor.u32 %v495_v36, %v494_v34 }
 0x184   : > { %v502_v43 = vsel %vm500_vm5, %v490_v40, 2102212464  ;;  %v505_v44 = vsel %vm497_vm4, %v484_v38, %v487_v39  ;;  %v509_v45 = vsel %vm497_vm4, %v487_v39, %v490_v40  ;;  %v506_v47 = vsel %vm500_vm5, %v493_v41, 920167782 }
 0x185   : > { %v510_v48 = vsel %vm500_vm5, %v496_v42, 1326507024  ;;  %v507_v49 = vsel %vm499_vm6, %v490_v40, %v506_v47  ;;  %v501_v52 = vsel %vm497_vm4, %v481_v46, %v484_v38  ;;  %v503_v53 = vsel %vm499_vm6, %v487_v39, %v502_v43 }
 0x186   : > { %v511_v50 = vsel %vm499_vm6, %v493_v41, %v510_v48  ;;  %v508_v54 = vsel %vm498_vm7, %v505_v44, %v507_v49  ;;  %v504_v60 = vsel %vm498_vm7, %v501_v52, %v503_v53  ;;  %v3094_v53 = vld [vmem:[#allocation7] sm:$0xff]   ;;  %vm686_vm5 = vcmask 130048  }
 0x187   : > { %v512_v55 = vsel %vm498_vm7, %v509_v45, %v511_v50  ;;  %v3080_v58 = vmul.u32.u64.low %v513_v51, %v508_v54  ;;  %v3081_v59 = vmul.u32.u64.high %v513_v51, %v508_v54, %v3080_v58  ;;  %v520_v62 = vmul.u32 %v513_v51, %v504_v60  ;;  %2199 = vmatpush3.bf16.msra.mxu1 %v3094_v53  ;;  %v3098_v54 = vld [vmem:[#allocation7 + $0x8] sm:$0xff]  }
 0x188   : > { %v3077_v56 = vmul.u32.u64.low %v513_v51, %v512_v55  ;;  %v3078_v57 = vmul.u32.u64.high %v513_v51, %v512_v55, %v3077_v56  ;;  %2200 = vmatprep.subr.bf16.mxu1 %v2738_v3  ;;  %v407_v55 = vld [vmem:[#allocation3] sm:$0xff] }
 0x189   : > { %v523_v61 = vadd.s32 1, %v3081_v59 }
 0x18a   : > { %vm522_vm8 = vc.u32 %v3078_v57, %v3080_v58  ;;  %v521_v14 = vadd.s32 %v3080_v58, %v3078_v57  ;;  %v2107_v58 = vmul.f32 -1.442695, %v3060_v7 }
 0x18b   : > { %v524_v63 = vsel %vm522_vm8, %v523_v61, %v3081_v59  ;;  %2201 = vmatpush3.bf16.msra.mxu1 %v3098_v54 }
 0x18c   : > { %v525_v0 = vadd.s32 %v524_v63, %v520_v62  ;;  %2214 = vmatprep.subr.bf16.mxu1 %v2738_v3 }
 0x18e   : > { %v526_v1 = vadd.s32 536870912, %v525_v0 }
 0x190   : > { %v527_v5 = vshrl.u32 %v526_v1, 30  ;;  %v696_v1 = vmax.f32 %v3060_v7, 0.0 }
 0x192   : > { %v528_v6 = vshll.u32 %v527_v5, 30  ;;  %v551_v31 = vsub.s32 4, %v527_v5 }
 0x194   : > { %v529_v8 = vsub.s32 %v525_v0, %v528_v6  ;;  %v552_v36 = vsel %vm467_vm10, %v551_v31, %v527_v5 }
 0x195   : > { %v554_v38 = vsel %vm466_vm11, 0, %v552_v36 }
 0x196   : > { %v531_v9 = vsub.s32 0, %v529_v8  ;;  %v661_v39 = vadd.s32 3, %v554_v38  ;;  %v558_v41 = vand.u32 3, %v554_v38 }
 0x198   : > { %v2100_v10 = vmin.u32 %v531_v9, %v529_v8  ;;  %v662_v40 = vand.u32 3, %v661_v39  ;;  %vm560_vm14 = vcmp.eq.s32.totalorder %v558_v41, 0  ;;  %vm563_vm15 = vcmp.eq.s32.totalorder %v558_v41, 2 }
 0x199   : > { %vm559_vm4 = vcmp.lt.s32.totalorder %v558_v41, 2 }
 0x19a   : > { %v533_v11 = vclz %v2100_v10  ;;  %vm667_vm12 = vcmp.eq.s32.totalorder %v662_v40, 2  ;;  %vm664_vm13 = vcmp.eq.s32.totalorder %v662_v40, 0  ;;  %vm663_vm0 = vcmp.lt.s32.totalorder %v662_v40, 2 }
 0x19c   : > { %v2101_v12 = vadd.s32 4294967294, %v533_v11 }
 0x19e   : > { %vm2102_vm9 = vcmp.lt.s32.totalorder %v2101_v12, 0 }
 0x19f   : > { %v536_v13 = vsel %vm2102_vm9, 0, %v2101_v12 }
 0x1a0   : > { %v537_v16 = vsub.s32 32, %v536_v13  ;;  %v541_v17 = vsub.s32 4294967266, %v536_v13  ;;  %v538_v18 = vshll.u32 %v529_v8, %v536_v13 }
 0x1a2   : > { %v539_v19 = vshrl.u32 %v521_v14, %v537_v16  ;;  %v542_v20 = vadd.s32 127, %v541_v17 }
 0x1a4   : > { %v540_v22 = vor.u32 %v539_v19, %v538_v18  ;;  %v543_v24 = vshll.u32 %v542_v20, 23 }
 0x1a6   : > { %v544_v25 = vor.u32 4788187, %v543_v24  ;;  %v547_v28 = vcvt.s32.f32 %v540_v22 }
 0x1a8   : > { %v545_v27 = vand.u32 2147483647, %v544_v25 }
 0x1aa   : > { %v548_v30 = vmul.f32 %v547_v28, %v545_v27 }
 0x1ac   : > { %v549_v33 = vxor.u32 2147483648, %v548_v30 }
 0x1ae   : > { %v550_v34 = vsel %vm467_vm10, %v549_v33, %v548_v30 }
 0x1af   : > { %v553_v37 = vsel %vm466_vm11, %v3060_v7, %v550_v34 }
 0x1b0   : > { %2398 = vcosq.f32 %v553_v37 }
 0x1b1   : > { %2400 = vsinq.f32 %v553_v37 }
 0x1b2   : > { %2402 = vpow2.f32 %v2107_v58 }
 0x1ba   : > { %v2399_v42 = vpop.eup %2398 }
 0x1bb   : > { %v2401_v43 = vpop.eup %2400  ;;  %v564_v44 = vxor.u32 2147483648, %v2399_v42 }
 0x1bc   : > { %v561_v45 = vxor.u32 2147483648, %v2401_v43  ;;  %v2403_v59 = vpop.eup %2402 }
 0x1bd   : > { %v669_v46 = vsel %vm667_vm12, %v564_v44, %v2401_v43  ;;  %v565_v48 = vsel %vm563_vm15, %v564_v44, %v2401_v43  ;;  %v691_v60 = vadd.f32 1.0, %v2403_v59 }
 0x1be   : > { %v666_v15 = vsel %vm664_vm13, %v2399_v42, %v561_v45  ;;  %v562_v47 = vsel %vm560_vm14, %v2399_v42, %v561_v45 }
 0x1bf   : > { %v670_v49 = vsel %vm663_vm0, %v666_v15, %v669_v46  ;;  %v566_v51 = vsel %vm559_vm4, %v562_v47, %v565_v48  ;;  %2404 = vrcp.f32 %v691_v60 }
 0x1c0   : > { %v671_v50 = vsel %vm557_vm3, nan, %v670_v49  ;;  %v567_v52 = vsel %vm557_vm3, nan, %v566_v51  ;;  %2406 = vtanh.f32 %v3060_v7  ;;  %v3116_v7 = vld [vmem:[%s3018_s24] sm:$0xff]  }
 0x1c1   : > { %678 = vrot.lane.b32.xlu0 %v671_v50, %s2746_s9  ;;  %v701_v13 = vunpack.c.l.bf16 %v3116_v7 }
 0x1c5   : > { %673 = vrot.lane.b32.xlu0 %v567_v52, %s2746_s9 }
 0x1c9   : > { %767 = vrot.lane.b32.xlu0 %v407_v55, %s2747_s21  ;;  %v2405_v61 = vpop.eup %2404 }
 0x1ca   : > { %v2407_v62 = vpop.eup %2406 }
 0x1cb   : > { %v695_v0 = vadd.f32 %v2407_v62, %v2405_v61 }
 0x1cd   : > { %v697_v6 = vadd.f32 %v696_v1, %v695_v0 }
 0x233   : > { %v679_v56 = vpop.permute.xlu0 %678 }
 0x234   : > { %v681_v57 = vadd.f32 %v679_v56, %v671_v50 }
 0x236   : > { %683 = vrot.lane.b32.xlu1 %v681_v57, %s2748_s18 }
 0x237   : > { %v674_v63 = vpop.permute.xlu0 %673 }
 0x238   : > { %v676_v5 = vadd.f32 %v674_v63, %v567_v52 }
 0x23b   : > { %v768_v31 = vpop.permute.xlu0 %767 }
 0x2a8   : > { %v684_v8 = vpop.permute.xlu1 %683 }
 0x2a9   : > { %v687_v9 = vsel %vm686_vm5, %v676_v5, %v684_v8 }
 0x2aa   : > { %v698_v10 = vadd.f32 %v697_v6, %v687_v9 }
 0x2ac   : > { %v699_v11 = vmul.f32 0.088388346, %v698_v10 }
 0x2ae   : > { %v702_v12 = vpack.c.bf16 %v699_v11, %v699_v11 }
 0x2b0   : > { %2203 = vmatmul.mubr.msk.bf16.vlgmr.msra.gmra.mrb[0].mxu1 %vm421_vm2, %v702_v12 }
 0x2b1   : > { %2215 = vmatpush3.bf16.msra.mxu1 %v3094_v53  ;;  %2218 = vmatprep.mubr.msk.bf16.mxu1 %vm2739_vm1, %v2738_v3 }
 0x2b2   : > { %2216 = vmatprep.subr.bf16.mxu1 %v2738_v3 }
 0x2b5   : > { %2217 = vmatpush3.bf16.msra.mxu1 %v3098_v54 }
 0x2b6   : > { %2230 = vmatprep.subr.bf16.mxu1 %v2738_v3 }
 0x383   : > { %v752_v14 = vpop.f32.mrb[0].mxu1 }
 0x384   : > { %v758_v16 = vadd.f32 %v752_v14, %v701_v13  ;;  %v2204_v17 = vpop.f32.mrb[1].mxu1 }
 0x385   : > { %v755_v18 = vpop.f32.mrb[2].mxu1 }
 0x386   : > { %2408 = vtanh.f32 %v758_v16  ;;  %v2205_v19 = vpop.f32.mrb[3].mxu1  ;;  %v2111_v22 = vmul.f32 -1.442695, %v758_v16 }
 0x388   : > { %2410 = vpow2.f32 %v2111_v22 }
 0x390   : > { %v2409_v20 = vpop.eup %2408 }
 0x391   : > { %772 = vrot.lane.b32.xlu1 %v2409_v20, %s2749_s5 }
 0x392   : > { %v2411_v24 = vpop.eup %2410 }
 0x393   : > { %v762_v25 = vadd.f32 1.0, %v2411_v24 }
 0x395   : > { %2412 = vrcp.f32 %v762_v25 }
 0x39f   : > { %v2413_v27 = vpop.eup %2412 }
 0x3a0   : > { %v770_v33 = vmul.f32 %v2413_v27, %v768_v31 }
 0x403   : > { %v773_v28 = vpop.permute.xlu1 %772 }
 0x404   : > { %v775_v30 = vmul.f32 %v2413_v27, %v773_v28 }
 0x406   : > { %777 = vrot.lane.b32.xlu1 %v775_v30, %s2747_s21 }
 0x478   : > { %v778_v34 = vpop.permute.xlu1 %777 }
 0x479   : > { %v3121_v36 = vadd.f32 %v778_v34, %v770_v33 }
 0x47b   : > { %2414 = vtanh.f32 %v3121_v36 }
 0x485   : > { %v2415_v37 = vpop.eup %2414 }
 0x486   : > { %783 = vrot.lane.b32.xlu0 %v2415_v37, %s2749_s5 }
 0x4f8   : > { %v784_v38 = vpop.permute.xlu0 %783 }
 0x4f9   : > { %v3125_v39 = vmul.f32 %v2413_v27, %v784_v38 }
 0x4fb   : > { %v792_v40 = vpack.c.bf16 %v3125_v39, %v3125_v39 }
 0x4fd   : > { %794 = vrot.lane.b32.xlu1 %v792_v40, %s2747_s21 }
 0x56f   : > { %v795_v41 = vpop.permute.xlu1 %794 }
 0x570   : > { %2211 = vmatmul.mubr.msk.bf16.vlgmr.msra.gmra.mrb[4].mxu0 %vm421_vm2, %v795_v41 }
 0x571   : > { %2223 = vmatpush3.bf16.msra.mxu0 %v3039_v2  ;;  %2226 = vmatprep.mubr.msk.bf16.mxu0 %vm2739_vm1, %v2738_v3 }
 0x572   : > { %2224 = vmatprep.subr.bf16.mxu0 %v2738_v3 }
 0x575   : > { %2225 = vmatpush3.bf16.msra.mxu0 %v3042_v4 }
 0x576   : > { %2238 = vmatprep.subr.bf16.mxu0 %v2738_v3 }
 0x643   : > { %v3137_v42 = vpop.f32.mrb[4].mxu0 }
 0x644   : > { %v842_v43 = vand.u32 2139095040, %v3137_v42  ;;  %v2212_v44 = vpop.f32.mrb[5].mxu0  ;;  %v839_v49 = vand.u32 2147483647, %v3137_v42  ;;  %vm841_vm13 = vcmp.lt.s32.totalorder %v3137_v42, 0 }
 0x645   : > { %v836_v45 = vpop.f32.mrb[6].mxu0 }
 0x646   : > { %v843_v46 = vshrl.u32 %v842_v43, 23  ;;  %v2213_v15 = vpop.f32.mrb[7].mxu0  ;;  %v846_v55 = vand.u32 8388607, %v839_v49  ;;  %vm840_vm14 = vcmp.le.f32.partialorder %v839_v49, 0.7853982 }
 0x648   : > { %v2113_v47 = vadd.s32 4294967169, %v843_v46  ;;  %v847_v6 = vor.u32 8388608, %v846_v55 }
 0x64a   : > { %v849_v48 = vadd.s32 1, %v2113_v47  ;;  %v887_v24 = vshll.u32 %v847_v6, 8 }
 0x64c   : > { %vm850_vm6 = vcmp.gt.s32.totalorder %v849_v48, 0 }
 0x64d   : > { %v851_v50 = vsel %vm850_vm6, %v849_v48, 0 }
 0x64e   : > { %v853_v51 = vand.u32 31, %v851_v50  ;;  %v852_v56 = vshrl.u32 %v851_v50, 5 }
 0x650   : > { %v854_v52 = vsub.s32 32, %v853_v51  ;;  %v856_v57 = vshll.u32 %v2740_v21, %v853_v51  ;;  %v859_v58 = vshll.u32 %v2741_v23, %v853_v51  ;;  %v862_v61 = vshll.u32 %v2742_v26, %v853_v51 }
 0x651   : > { %v865_v63 = vshll.u32 %v2743_v29, %v853_v51  ;;  %v868_v1 = vshll.u32 %v2744_v32, %v853_v51  ;;  %vm871_vm7 = vcmp.lt.s32.totalorder %v852_v56, 1  ;;  %vm874_vm8 = vcmp.lt.s32.totalorder %v852_v56, 4 }
 0x652   : > { %v857_v59 = vshrl.u32 %v2741_v23, %v854_v52  ;;  %v860_v60 = vshrl.u32 %v2742_v26, %v854_v52  ;;  %v863_v62 = vshrl.u32 %v2743_v29, %v854_v52  ;;  %v866_v0 = vshrl.u32 %v2744_v32, %v854_v52 }
 0x653   : > { %v869_v5 = vshrl.u32 %v2745_v35, %v854_v52  ;;  %v855_v17 = vshrl.u32 %v2740_v21, %v854_v52  ;;  %vm873_vm9 = vcmp.lt.s32.totalorder %v852_v56, 3  ;;  %vm872_vm10 = vcmp.lt.s32.totalorder %v852_v56, 2 }
 0x654   : > { %v858_v8 = vor.u32 %v857_v59, %v856_v57  ;;  %v861_v9 = vor.u32 %v860_v60, %v859_v58  ;;  %v864_v10 = vor.u32 %v863_v62, %v862_v61  ;;  %v867_v11 = vor.u32 %v866_v0, %v865_v63 }
 0x655   : > { %v870_v12 = vor.u32 %v869_v5, %v868_v1 }
 0x656   : > { %v876_v13 = vsel %vm874_vm8, %v864_v10, 2102212464  ;;  %v879_v14 = vsel %vm871_vm7, %v858_v8, %v861_v9  ;;  %v883_v16 = vsel %vm871_vm7, %v861_v9, %v864_v10  ;;  %v880_v18 = vsel %vm874_vm8, %v867_v11, 920167782 }
 0x657   : > { %v884_v19 = vsel %vm874_vm8, %v870_v12, 1326507024  ;;  %v881_v20 = vsel %vm873_vm9, %v864_v10, %v880_v18  ;;  %v875_v25 = vsel %vm871_vm7, %v855_v17, %v858_v8  ;;  %v877_v27 = vsel %vm873_vm9, %v861_v9, %v876_v13 }
 0x658   : > { %v885_v22 = vsel %vm873_vm9, %v867_v11, %v884_v19  ;;  %v882_v28 = vsel %vm872_vm10, %v879_v14, %v881_v20  ;;  %v878_v38 = vsel %vm872_vm10, %v875_v25, %v877_v27  ;;  %vm931_vm8 = vweird.f32 %v3137_v42 }
 0x659   : > { %v886_v30 = vsel %vm872_vm10, %v883_v16, %v885_v22  ;;  %v3157_v34 = vmul.u32.u64.low %v887_v24, %v882_v28  ;;  %v3158_v37 = vmul.u32.u64.high %v887_v24, %v882_v28, %v3157_v34  ;;  %v894_v41 = vmul.u32 %v887_v24, %v878_v38 }
 0x65a   : > { %v3154_v31 = vmul.u32.u64.low %v887_v24, %v886_v30  ;;  %v3155_v33 = vmul.u32.u64.high %v887_v24, %v886_v30, %v3154_v31  ;;  %v2121_v38 = vmul.f32 -1.442695, %v3137_v42 }
 0x65b   : > { %v897_v40 = vadd.s32 1, %v3158_v37 }
 0x65c   : > { %vm896_vm11 = vc.u32 %v3155_v33, %v3157_v34  ;;  %v895_v56 = vadd.s32 %v3157_v34, %v3155_v33 }
 0x65d   : > { %v898_v43 = vsel %vm896_vm11, %v897_v40, %v3158_v37 }
 0x65e   : > { %v899_v44 = vadd.s32 %v898_v43, %v894_v41 }
 0x660   : > { %v900_v45 = vadd.s32 536870912, %v899_v44 }
 0x662   : > { %v901_v46 = vshrl.u32 %v900_v45, 30 }
 0x664   : > { %v902_v15 = vshll.u32 %v901_v46, 30  ;;  %v925_v8 = vsub.s32 4, %v901_v46 }
 0x666   : > { %v903_v47 = vsub.s32 %v899_v44, %v902_v15  ;;  %v926_v11 = vsel %vm841_vm13, %v925_v8, %v901_v46  ;;  %v1069_v15 = vmax.f32 %v3137_v42, 0.0 }
 0x667   : > { %v928_v13 = vsel %vm840_vm14, 0, %v926_v11 }
 0x668   : > { %v905_v48 = vsub.s32 0, %v903_v47  ;;  %v1035_v14 = vadd.s32 3, %v928_v13  ;;  %v932_v17 = vand.u32 3, %v928_v13 }
 0x66a   : > { %v2114_v50 = vmin.u32 %v905_v48, %v903_v47  ;;  %v1036_v16 = vand.u32 3, %v1035_v14  ;;  %vm937_vm0 = vcmp.eq.s32.totalorder %v932_v17, 2  ;;  %vm934_vm4 = vcmp.eq.s32.totalorder %v932_v17, 0 }
 0x66b   : > { %vm933_vm7 = vcmp.lt.s32.totalorder %v932_v17, 2 }
 0x66c   : > { %v907_v51 = vclz %v2114_v50  ;;  %vm1041_vm15 = vcmp.eq.s32.totalorder %v1036_v16, 2  ;;  %vm1038_vm3 = vcmp.eq.s32.totalorder %v1036_v16, 0  ;;  %vm1037_vm6 = vcmp.lt.s32.totalorder %v1036_v16, 2 }
 0x66e   : > { %v2115_v52 = vadd.s32 4294967294, %v907_v51 }
 0x670   : > { %vm2116_vm12 = vcmp.lt.s32.totalorder %v2115_v52, 0 }
 0x671   : > { %v910_v55 = vsel %vm2116_vm12, 0, %v2115_v52 }
 0x672   : > { %v911_v57 = vsub.s32 32, %v910_v55  ;;  %v915_v58 = vsub.s32 4294967266, %v910_v55  ;;  %v912_v59 = vshll.u32 %v903_v47, %v910_v55 }
 0x674   : > { %v913_v60 = vshrl.u32 %v895_v56, %v911_v57  ;;  %v916_v61 = vadd.s32 127, %v915_v58 }
 0x676   : > { %v914_v62 = vor.u32 %v913_v60, %v912_v59  ;;  %v917_v63 = vshll.u32 %v916_v61, 23 }
 0x678   : > { %v918_v0 = vor.u32 4788187, %v917_v63  ;;  %v921_v5 = vcvt.s32.f32 %v914_v62 }
 0x67a   : > { %v919_v1 = vand.u32 2147483647, %v918_v0 }
 0x67c   : > { %v922_v6 = vmul.f32 %v921_v5, %v919_v1 }
 0x67e   : > { %v923_v9 = vxor.u32 2147483648, %v922_v6 }
 0x680   : > { %v924_v10 = vsel %vm841_vm13, %v923_v9, %v922_v6 }
 0x681   : > { %v927_v12 = vsel %vm840_vm14, %v3137_v42, %v924_v10 }
 0x682   : > { %2416 = vcosq.f32 %v927_v12 }
 0x683   : > { %2418 = vsinq.f32 %v927_v12 }
 0x684   : > { %2420 = vpow2.f32 %v2121_v38 }
 0x68c   : > { %v2417_v18 = vpop.eup %2416 }
 0x68d   : > { %v2419_v19 = vpop.eup %2418  ;;  %v938_v20 = vxor.u32 2147483648, %v2417_v18 }
 0x68e   : > { %v935_v22 = vxor.u32 2147483648, %v2419_v19  ;;  %v2421_v40 = vpop.eup %2420 }
 0x68f   : > { %v1043_v24 = vsel %vm1041_vm15, %v938_v20, %v2419_v19  ;;  %v939_v49 = vsel %vm937_vm0, %v938_v20, %v2419_v19  ;;  %v1064_v41 = vadd.f32 1.0, %v2421_v40 }
 0x690   : > { %v1040_v25 = vsel %vm1038_vm3, %v2417_v18, %v935_v22  ;;  %v936_v27 = vsel %vm934_vm4, %v2417_v18, %v935_v22 }
 0x691   : > { %v1044_v28 = vsel %vm1037_vm6, %v1040_v25, %v1043_v24  ;;  %v940_v30 = vsel %vm933_vm7, %v936_v27, %v939_v49  ;;  %2422 = vrcp.f32 %v1064_v41 }
 0x692   : > { %v1045_v31 = vsel %vm931_vm8, nan, %v1044_v28  ;;  %v941_v33 = vsel %vm931_vm8, nan, %v940_v30  ;;  %2424 = vtanh.f32 %v3137_v42  ;;  %v1075_v42 = vunpack.c.h.bf16 %v3116_v7 }
 0x693   : > { %1052 = vrot.lane.b32.xlu0 %v1045_v31, %s2746_s9  ;;  %1047 = vrot.lane.b32.xlu1 %v941_v33, %s2746_s9 }
 0x69b   : > { %v2423_v43 = vpop.eup %2422 }
 0x69c   : > { %v2425_v44 = vpop.eup %2424 }
 0x69d   : > { %v1068_v46 = vadd.f32 %v2425_v44, %v2423_v43 }
 0x69f   : > { %v1070_v48 = vadd.f32 %v1069_v15, %v1068_v46 }
 0x705   : > { %v1053_v34 = vpop.permute.xlu0 %1052  ;;  %v1048_v45 = vpop.permute.xlu1 %1047 }
 0x706   : > { %v1055_v37 = vadd.f32 %v1053_v34, %v1045_v31  ;;  %v1050_v47 = vadd.f32 %v1048_v45, %v941_v33 }
 0x708   : > { %1057 = vrot.lane.b32.xlu0 %v1055_v37, %s2748_s18 }
 0x77a   : > { %v1058_v50 = vpop.permute.xlu0 %1057 }
 0x77b   : > { %v1060_v51 = vsel %vm686_vm5, %v1050_v47, %v1058_v50 }
 0x77c   : > { %v1071_v52 = vadd.f32 %v1070_v48, %v1060_v51 }
 0x77e   : > { %v1072_v55 = vmul.f32 0.088388346, %v1071_v52 }
 0x780   : > { %v1076_v56 = vpack.c.bf16 %v1072_v55, %v1072_v55 }
 0x782   : > { %2219 = vmatmul.mubr.msk.bf16.vlgmr.msra.gmra.mrb[4].mxu1 %vm421_vm2, %v1076_v56 }
 0x783   : > { %2231 = vmatpush3.bf16.msra.mxu1 %v3094_v53  ;;  %2234 = vmatprep.mubr.msk.bf16.mxu1 %vm2739_vm1, %v2738_v3 }
 0x784   : > { %2232 = vmatprep.subr.bf16.mxu1 %v2738_v3 }
 0x787   : > { %2233 = vmatpush3.bf16.msra.mxu1 %v3098_v54 }
 0x788   : > { %2246 = vmatprep.subr.bf16.mxu1 %v2738_v3 }
 0x855   : > { %v1114_v57 = vpop.f32.mrb[4].mxu1 }
 0x856   : > { %v1120_v58 = vadd.f32 %v1114_v57, %v1075_v42  ;;  %v2220_v59 = vpop.f32.mrb[5].mxu1 }
 0x857   : > { %v1117_v60 = vpop.f32.mrb[6].mxu1 }
 0x858   : > { %2426 = vtanh.f32 %v1120_v58  ;;  %v2221_v61 = vpop.f32.mrb[7].mxu1  ;;  %v2124_v63 = vmul.f32 -1.442695, %v1120_v58 }
 0x85a   : > { %2428 = vpow2.f32 %v2124_v63 }
 0x862   : > { %v2427_v62 = vpop.eup %2426 }
 0x863   : > { %1130 = vrot.lane.b32.xlu1 %v2427_v62, %s2749_s5 }
 0x864   : > { %v2429_v0 = vpop.eup %2428 }
 0x865   : > { %v1124_v1 = vadd.f32 1.0, %v2429_v0 }
 0x867   : > { %2430 = vrcp.f32 %v1124_v1 }
 0x871   : > { %v2431_v5 = vpop.eup %2430 }
 0x872   : > { %v1128_v7 = vmul.f32 %v2431_v5, %v3121_v36 }
 0x8d5   : > { %v1131_v6 = vpop.permute.xlu1 %1130 }
 0x8d6   : > { %v1133_v8 = vmul.f32 %v2431_v5, %v1131_v6 }
 0x8d8   : > { %1135 = vrot.lane.b32.xlu0 %v1133_v8, %s2747_s21 }
 0x94a   : > { %v1136_v9 = vpop.permute.xlu0 %1135 }
 0x94b   : > { %v3187_v10 = vadd.f32 %v1136_v9, %v1128_v7 }
 0x94d   : > { %2432 = vtanh.f32 %v3187_v10 }
 0x957   : > { %v2433_v11 = vpop.eup %2432 }
 0x958   : > { %1141 = vrot.lane.b32.xlu1 %v2433_v11, %s2749_s5 }
 0x9ca   : > { %v1142_v12 = vpop.permute.xlu1 %1141 }
 0x9cb   : > { %v3191_v13 = vmul.f32 %v2431_v5, %v1142_v12 }
 0x9cd   : > { %v1151_v14 = vpack.c.bf16 %v3191_v13, %v3191_v13 }
 0x9cf   : > { %1153 = vrot.lane.b32.xlu0 %v1151_v14, %s2747_s21 }
 0xa41   : > { %v1154_v16 = vpop.permute.xlu0 %1153 }
 0xa42   : > { %2227 = vmatmul.mubr.msk.bf16.vlgmr.msra.gmra.mrb[8].mxu0 %vm421_vm2, %v1154_v16 }
 0xa43   : > { %2239 = vmatpush3.bf16.msra.mxu0 %v3039_v2  ;;  %2242 = vmatprep.mubr.msk.bf16.mxu0 %vm2739_vm1, %v2738_v3 }
 0xa44   : > { %2240 = vmatprep.subr.bf16.mxu0 %v2738_v3 }
 0xa47   : > { %2241 = vmatpush3.bf16.msra.mxu0 %v3042_v4 }
 0xb15   : > { %v3202_v36 = vpop.f32.mrb[8].mxu0 }
 0xb16   : > { %v1201_v17 = vand.u32 2139095040, %v3202_v36  ;;  %v2228_v18 = vpop.f32.mrb[9].mxu0  ;;  %v1198_v2 = vand.u32 2147483647, %v3202_v36  ;;  %vm1200_vm0 = vcmp.lt.s32.totalorder %v3202_v36, 0 }
 0xb17   : > { %v1195_v19 = vpop.f32.mrb[10].mxu0 }
 0xb18   : > { %v1202_v20 = vshrl.u32 %v1201_v17, 23  ;;  %v2229_v22 = vpop.f32.mrb[11].mxu0  ;;  %v1205_v30 = vand.u32 8388607, %v1198_v2  ;;  %vm1199_vm3 = vcmp.le.f32.partialorder %v1198_v2, 0.7853982 }
 0xb1a   : > { %v2127_v24 = vadd.s32 4294967169, %v1202_v20  ;;  %v1206_v46 = vor.u32 8388608, %v1205_v30 }
 0xb1c   : > { %v1208_v49 = vadd.s32 1, %v2127_v24  ;;  %v1246_v61 = vshll.u32 %v1206_v46, 8 }
 0xb1e   : > { %vm1209_vm9 = vcmp.gt.s32.totalorder %v1208_v49, 0 }
 0xb1f   : > { %v1210_v25 = vsel %vm1209_vm9, %v1208_v49, 0 }
 0xb20   : > { %v1212_v27 = vand.u32 31, %v1210_v25  ;;  %v1211_v4 = vshrl.u32 %v1210_v25, 5 }
 0xb22   : > { %v1213_v28 = vsub.s32 32, %v1212_v27  ;;  %v1215_v31 = vshll.u32 %v2740_v21, %v1212_v27  ;;  %v1218_v33 = vshll.u32 %v2741_v23, %v1212_v27  ;;  %v1221_v38 = vshll.u32 %v2742_v26, %v1212_v27 }
 0xb23   : > { %v1224_v41 = vshll.u32 %v2743_v29, %v1212_v27  ;;  %v1227_v44 = vshll.u32 %v2744_v32, %v1212_v27  ;;  %vm1230_vm10 = vcmp.lt.s32.totalorder %v1211_v4, 1  ;;  %vm1233_vm11 = vcmp.lt.s32.totalorder %v1211_v4, 4 }
 0xb24   : > { %v1216_v34 = vshrl.u32 %v2741_v23, %v1213_v28  ;;  %v1219_v37 = vshrl.u32 %v2742_v26, %v1213_v28  ;;  %v1222_v40 = vshrl.u32 %v2743_v29, %v1213_v28  ;;  %v1225_v43 = vshrl.u32 %v2744_v32, %v1213_v28 }
 0xb25   : > { %v1228_v45 = vshrl.u32 %v2745_v35, %v1213_v28  ;;  %v1214_v42 = vshrl.u32 %v2740_v21, %v1213_v28  ;;  %vm1232_vm12 = vcmp.lt.s32.totalorder %v1211_v4, 3  ;;  %vm1231_vm13 = vcmp.lt.s32.totalorder %v1211_v4, 2 }
 0xb26   : > { %v1217_v15 = vor.u32 %v1216_v34, %v1215_v31  ;;  %v1220_v47 = vor.u32 %v1219_v37, %v1218_v33  ;;  %v1223_v48 = vor.u32 %v1222_v40, %v1221_v38  ;;  %v1226_v50 = vor.u32 %v1225_v43, %v1224_v41 }
 0xb27   : > { %v1229_v51 = vor.u32 %v1228_v45, %v1227_v44 }
 0xb28   : > { %v1235_v52 = vsel %vm1233_vm11, %v1223_v48, 2102212464  ;;  %v1238_v55 = vsel %vm1230_vm10, %v1217_v15, %v1220_v47  ;;  %v1242_v56 = vsel %vm1230_vm10, %v1220_v47, %v1223_v48  ;;  %v1239_v57 = vsel %vm1233_vm11, %v1226_v50, 920167782 }
 0xb29   : > { %v1243_v58 = vsel %vm1233_vm11, %v1229_v51, 1326507024  ;;  %v1240_v59 = vsel %vm1232_vm12, %v1223_v48, %v1239_v57  ;;  %v1234_v62 = vsel %vm1230_vm10, %v1214_v42, %v1217_v15  ;;  %v1236_v63 = vsel %vm1232_vm12, %v1220_v47, %v1235_v52 }
 0xb2a   : > { %v1244_v60 = vsel %vm1232_vm12, %v1226_v50, %v1243_v58  ;;  %v1241_v0 = vsel %vm1231_vm13, %v1238_v55, %v1240_v59  ;;  %v1237_v9 = vsel %vm1231_vm13, %v1234_v62, %v1236_v63  ;;  %vm1290_vm11 = vweird.f32 %v3202_v36 }
 0xb2b   : > { %v1245_v1 = vsel %vm1231_vm13, %v1242_v56, %v1244_v60  ;;  %v3222_v8 = vmul.u32.u64.low %v1246_v61, %v1241_v0  ;;  %v3223_v7 = vmul.u32.u64.high %v1246_v61, %v1241_v0, %v3222_v8  ;;  %v1253_v12 = vmul.u32 %v1246_v61, %v1237_v9 }
 0xb2c   : > { %v3219_v5 = vmul.u32.u64.low %v1246_v61, %v1245_v1  ;;  %v3220_v6 = vmul.u32.u64.high %v1246_v61, %v1245_v1, %v3219_v5 }
 0xb2d   : > { %v1256_v11 = vadd.s32 1, %v3223_v7 }
 0xb2e   : > { %vm1255_vm14 = vc.u32 %v3220_v6, %v3222_v8  ;;  %v1254_v28 = vadd.s32 %v3222_v8, %v3220_v6  ;;  %v2135_v8 = vmul.f32 -1.442695, %v3202_v36 }
 0xb2f   : > { %v1257_v14 = vsel %vm1255_vm14, %v1256_v11, %v3223_v7 }
 0xb30   : > { %v1258_v16 = vadd.s32 %v1257_v14, %v1253_v12 }
 0xb32   : > { %v1259_v17 = vadd.s32 536870912, %v1258_v16 }
 0xb34   : > { %v1260_v18 = vshrl.u32 %v1259_v17, 30  ;;  %v1428_v17 = vmax.f32 %v3202_v36, 0.0 }
 0xb36   : > { %v1261_v19 = vshll.u32 %v1260_v18, 30  ;;  %v1284_v45 = vsub.s32 4, %v1260_v18 }
 0xb38   : > { %v1262_v20 = vsub.s32 %v1258_v16, %v1261_v19  ;;  %v1285_v47 = vsel %vm1200_vm0, %v1284_v45, %v1260_v18 }
 0xb39   : > { %v1287_v50 = vsel %vm1199_vm3, 0, %v1285_v47 }
 0xb3a   : > { %v1264_v22 = vsub.s32 0, %v1262_v20  ;;  %v1394_v51 = vadd.s32 3, %v1287_v50  ;;  %v1291_v55 = vand.u32 3, %v1287_v50 }
 0xb3c   : > { %v2128_v24 = vmin.u32 %v1264_v22, %v1262_v20  ;;  %v1395_v52 = vand.u32 3, %v1394_v51  ;;  %vm1296_vm6 = vcmp.eq.s32.totalorder %v1291_v55, 2  ;;  %vm1293_vm8 = vcmp.eq.s32.totalorder %v1291_v55, 0 }
 0xb3d   : > { %vm1292_vm10 = vcmp.lt.s32.totalorder %v1291_v55, 2 }
 0xb3e   : > { %v1266_v49 = vclz %v2128_v24  ;;  %vm1400_vm4 = vcmp.eq.s32.totalorder %v1395_v52, 2  ;;  %vm1397_vm7 = vcmp.eq.s32.totalorder %v1395_v52, 0  ;;  %vm1396_vm9 = vcmp.lt.s32.totalorder %v1395_v52, 2 }
 0xb40   : > { %v2129_v25 = vadd.s32 4294967294, %v1266_v49 }
 0xb42   : > { %vm2130_vm15 = vcmp.lt.s32.totalorder %v2129_v25, 0 }
 0xb43   : > { %v1269_v27 = vsel %vm2130_vm15, 0, %v2129_v25 }
 0xb44   : > { %v1270_v30 = vsub.s32 32, %v1269_v27  ;;  %v1274_v4 = vsub.s32 4294967266, %v1269_v27  ;;  %v1271_v31 = vshll.u32 %v1262_v20, %v1269_v27 }
 0xb46   : > { %v1272_v33 = vshrl.u32 %v1254_v28, %v1270_v30  ;;  %v1275_v34 = vadd.s32 127, %v1274_v4 }
 0xb48   : > { %v1273_v37 = vor.u32 %v1272_v33, %v1271_v31  ;;  %v1276_v38 = vshll.u32 %v1275_v34, 23 }
 0xb4a   : > { %v1277_v40 = vor.u32 4788187, %v1276_v38  ;;  %v1280_v43 = vcvt.s32.f32 %v1273_v37 }
 0xb4c   : > { %v1278_v41 = vand.u32 2147483647, %v1277_v40 }
 0xb4e   : > { %v1281_v44 = vmul.f32 %v1280_v43, %v1278_v41 }
 0xb50   : > { %v1282_v46 = vxor.u32 2147483648, %v1281_v44 }
 0xb52   : > { %v1283_v15 = vsel %vm1200_vm0, %v1282_v46, %v1281_v44 }
 0xb53   : > { %v1286_v48 = vsel %vm1199_vm3, %v3202_v36, %v1283_v15 }
 0xb54   : > { %2434 = vcosq.f32 %v1286_v48 }
 0xb55   : > { %2436 = vsinq.f32 %v1286_v48 }
 0xb56   : > { %2438 = vpow2.f32 %v2135_v8 }
 0xb5e   : > { %v2435_v56 = vpop.eup %2434 }
 0xb5f   : > { %v2437_v42 = vpop.eup %2436  ;;  %v1297_v57 = vxor.u32 2147483648, %v2435_v56 }
 0xb60   : > { %v1294_v58 = vxor.u32 2147483648, %v2437_v42  ;;  %v2439_v7 = vpop.eup %2438 }
 0xb61   : > { %v1402_v59 = vsel %vm1400_vm4, %v1297_v57, %v2437_v42  ;;  %v1298_v2 = vsel %vm1296_vm6, %v1297_v57, %v2437_v42  ;;  %v1423_v9 = vadd.f32 1.0, %v2439_v7 }
 0xb62   : > { %v1399_v60 = vsel %vm1397_vm7, %v2435_v56, %v1294_v58  ;;  %v1295_v61 = vsel %vm1293_vm8, %v2435_v56, %v1294_v58 }
 0xb63   : > { %v1403_v62 = vsel %vm1396_vm9, %v1399_v60, %v1402_v59  ;;  %v1299_v63 = vsel %vm1292_vm10, %v1295_v61, %v1298_v2  ;;  %2440 = vrcp.f32 %v1423_v9 }
 0xb64   : > { %v1404_v0 = vsel %vm1290_vm11, nan, %v1403_v62  ;;  %v1300_v1 = vsel %vm1290_vm11, nan, %v1299_v63  ;;  %2442 = vtanh.f32 %v3202_v36  ;;  %v3248_v36 = vld [vmem:[%s3018_s24 + $0x8] sm:$0xff]  }
 0xb65   : > { %1411 = vrot.lane.b32.xlu1 %v1404_v0, %s2746_s9  ;;  %1406 = vrot.lane.b32.xlu0 %v1300_v1, %s2746_s9  ;;  %v1434_v27 = vunpack.c.l.bf16 %v3248_v36 }
 0xb6d   : > { %v2441_v11 = vpop.eup %2440 }
 0xb6e   : > { %v2443_v12 = vpop.eup %2442 }
 0xb6f   : > { %v1427_v16 = vadd.f32 %v2443_v12, %v2441_v11 }
 0xb71   : > { %v1429_v19 = vadd.f32 %v1428_v17, %v1427_v16 }
 0xbd7   : > { %v1412_v5 = vpop.permute.xlu1 %1411  ;;  %v1407_v14 = vpop.permute.xlu0 %1406 }
 0xbd8   : > { %v1414_v6 = vadd.f32 %v1412_v5, %v1404_v0  ;;  %v1409_v18 = vadd.f32 %v1407_v14, %v1300_v1 }
 0xbda   : > { %1416 = vrot.lane.b32.xlu1 %v1414_v6, %s2748_s18 }
 0xc4c   : > { %v1417_v20 = vpop.permute.xlu1 %1416 }
 0xc4d   : > { %v1419_v22 = vsel %vm686_vm5, %v1409_v18, %v1417_v20 }
 0xc4e   : > { %v1430_v24 = vadd.f32 %v1429_v19, %v1419_v22 }
 0xc50   : > { %v1431_v49 = vmul.f32 0.088388346, %v1430_v24 }
 0xc52   : > { %v1435_v25 = vpack.c.bf16 %v1431_v49, %v1431_v49 }
 0xc54   : > { %2235 = vmatmul.mubr.msk.bf16.vlgmr.msra.gmra.mrb[8].mxu1 %vm421_vm2, %v1435_v25 }
 0xc55   : > { %2247 = vmatpush3.bf16.msra.mxu1 %v3094_v53  ;;  %2250 = vmatprep.mubr.msk.bf16.mxu1 %vm2739_vm1, %v2738_v3 }
 0xc56   : > { %2248 = vmatprep.subr.bf16.mxu1 %v2738_v3 }
 0xc59   : > { %2249 = vmatpush3.bf16.msra.mxu1 %v3098_v54 }
 0xd27   : > { %v1473_v28 = vpop.f32.mrb[8].mxu1 }
 0xd28   : > { %v1479_v30 = vadd.f32 %v1473_v28, %v1434_v27  ;;  %v2236_v4 = vpop.f32.mrb[9].mxu1 }
 0xd29   : > { %v1476_v31 = vpop.f32.mrb[10].mxu1 }
 0xd2a   : > { %2444 = vtanh.f32 %v1479_v30  ;;  %v2237_v33 = vpop.f32.mrb[11].mxu1  ;;  %v2138_v53 = vmul.f32 -1.442695, %v1479_v30 }
 0xd2c   : > { %2446 = vpow2.f32 %v2138_v53 }
 0xd34   : > { %v2445_v34 = vpop.eup %2444 }
 0xd35   : > { %1489 = vrot.lane.b32.xlu0 %v2445_v34, %s2749_s5 }
 0xd36   : > { %v2447_v37 = vpop.eup %2446 }
 0xd37   : > { %v1483_v38 = vadd.f32 1.0, %v2447_v37 }
 0xd39   : > { %2448 = vrcp.f32 %v1483_v38 }
 0xd43   : > { %v2449_v3 = vpop.eup %2448 }
 0xd44   : > { %v1487_v41 = vmul.f32 %v2449_v3, %v3187_v10 }
 0xda7   : > { %v1490_v54 = vpop.permute.xlu0 %1489 }
 0xda8   : > { %v1492_v40 = vmul.f32 %v2449_v3, %v1490_v54 }
 0xdaa   : > { %1494 = vrot.lane.b32.xlu1 %v1492_v40, %s2747_s21 }
 0xe1c   : > { %v1495_v43 = vpop.permute.xlu1 %1494 }
 0xe1d   : > { %v3254_v44 = vadd.f32 %v1495_v43, %v1487_v41 }
 0xe1f   : > { %2450 = vtanh.f32 %v3254_v44 }
 0xe29   : > { %v2451_v45 = vpop.eup %2450 }
 0xe2a   : > { %1500 = vrot.lane.b32.xlu0 %v2451_v45, %s2749_s5 }
 0xe9c   : > { %v1501_v46 = vpop.permute.xlu0 %1500 }
 0xe9d   : > { %v3258_v15 = vmul.f32 %v2449_v3, %v1501_v46 }
 0xe9f   : > { %v1510_v47 = vpack.c.bf16 %v3258_v15, %v3258_v15 }
 0xea1   : > { %1512 = vrot.lane.b32.xlu1 %v1510_v47, %s2747_s21 }
 0xf13   : > { %v1513_v48 = vpop.permute.xlu1 %1512 }
 0xf14   : > { %2243 = vmatmul.mubr.msk.bf16.vlgmr.msra.gmra.mrb[12].mxu0 %vm421_vm2, %v1513_v48 }
 0xfe7   : > { %v3264_v10 = vpop.f32.mrb[12].mxu0 }
 0xfe8   : > { %v1560_v50 = vand.u32 2139095040, %v3264_v10  ;;  %v2244_v51 = vpop.f32.mrb[13].mxu0  ;;  %v1557_v58 = vand.u32 2147483647, %v3264_v10  ;;  %vm1559_vm4 = vcmp.lt.s32.totalorder %v3264_v10, 0 }
 0xfe9   : > { %v1554_v52 = vpop.f32.mrb[14].mxu0 }
 0xfea   : > { %v1561_v55 = vshrl.u32 %v1560_v50, 23  ;;  %v2245_v56 = vpop.f32.mrb[15].mxu0  ;;  %v1564_v61 = vand.u32 8388607, %v1557_v58  ;;  %vm1558_vm6 = vcmp.le.f32.partialorder %v1557_v58, 0.7853982 }
 0xfec   : > { %v2141_v42 = vadd.s32 4294967169, %v1561_v55  ;;  %v1565_v14 = vor.u32 8388608, %v1564_v61 }
 0xfee   : > { %v1567_v57 = vadd.s32 1, %v2141_v42 }
 0xff0   : > { %vm1568_vm1 = vcmp.gt.s32.totalorder %v1567_v57, 0 }
 0xff1   : > { %v1569_v59 = vsel %vm1568_vm1, %v1567_v57, 0 }
 0xff2   : > { %v1571_v2 = vand.u32 31, %v1569_v59  ;;  %v1570_v62 = vshrl.u32 %v1569_v59, 5 }
 0xff4   : > { %v1572_v60 = vsub.s32 32, %v1571_v2  ;;  %v1574_v63 = vshll.u32 %v2740_v21, %v1571_v2  ;;  %v1577_v0 = vshll.u32 %v2741_v23, %v1571_v2  ;;  %v1580_v6 = vshll.u32 %v2742_v26, %v1571_v2 }
 0xff5   : > { %v1583_v7 = vshll.u32 %v2743_v29, %v1571_v2  ;;  %v1586_v11 = vshll.u32 %v2744_v32, %v1571_v2  ;;  %vm1589_vm12 = vcmp.lt.s32.totalorder %v1570_v62, 1  ;;  %vm1592_vm13 = vcmp.lt.s32.totalorder %v1570_v62, 4 }
 0xff6   : > { %v1575_v1 = vshrl.u32 %v2741_v23, %v1572_v60  ;;  %v1578_v5 = vshrl.u32 %v2742_v26, %v1572_v60  ;;  %v1581_v8 = vshrl.u32 %v2743_v29, %v1572_v60  ;;  %v1584_v9 = vshrl.u32 %v2744_v32, %v1572_v60 }
 0xff7   : > { %v1587_v12 = vshrl.u32 %v2745_v35, %v1572_v60  ;;  %v1573_v24 = vshrl.u32 %v2740_v21, %v1572_v60  ;;  %vm1591_vm14 = vcmp.lt.s32.totalorder %v1570_v62, 3  ;;  %vm1590_vm15 = vcmp.lt.s32.totalorder %v1570_v62, 2 }
 0xff8   : > { %v1576_v16 = vor.u32 %v1575_v1, %v1574_v63  ;;  %v1579_v17 = vor.u32 %v1578_v5, %v1577_v0  ;;  %v1582_v18 = vor.u32 %v1581_v8, %v1580_v6  ;;  %v1585_v19 = vor.u32 %v1584_v9, %v1583_v7 }
 0xff9   : > { %v1588_v23 = vor.u32 %v1587_v12, %v1586_v11  ;;  %v1605_v35 = vshll.u32 %v1565_v14, 8 }
 0xffa   : > { %v1594_v20 = vsel %vm1592_vm13, %v1582_v18, 2102212464  ;;  %v1597_v26 = vsel %vm1589_vm12, %v1576_v16, %v1579_v17  ;;  %v1601_v22 = vsel %vm1589_vm12, %v1579_v17, %v1582_v18  ;;  %v1598_v29 = vsel %vm1592_vm13, %v1585_v19, 920167782 }
 0xffb   : > { %v1602_v49 = vsel %vm1592_vm13, %v1588_v23, 1326507024  ;;  %v1599_v32 = vsel %vm1591_vm14, %v1582_v18, %v1598_v29  ;;  %v1593_v27 = vsel %vm1589_vm12, %v1573_v24, %v1576_v16  ;;  %v1595_v28 = vsel %vm1591_vm14, %v1579_v17, %v1594_v20 }
 0xffc   : > { %v1603_v25 = vsel %vm1591_vm14, %v1585_v19, %v1602_v49  ;;  %v1600_v30 = vsel %vm1590_vm15, %v1597_v26, %v1599_v32  ;;  %v1596_v37 = vsel %vm1590_vm15, %v1593_v27, %v1595_v28  ;;  %vm1649_vm12 = vweird.f32 %v3264_v10 }
 0xffd   : > { %v1604_v4 = vsel %vm1590_vm15, %v1601_v22, %v1603_v25  ;;  %v3284_v34 = vmul.u32.u64.low %v1605_v35, %v1600_v30  ;;  %v3285_v53 = vmul.u32.u64.high %v1605_v35, %v1600_v30, %v3284_v34  ;;  %v1612_v38 = vmul.u32 %v1605_v35, %v1596_v37 }
 0xffe   : > { %v3281_v31 = vmul.u32.u64.low %v1605_v35, %v1604_v4  ;;  %v3282_v33 = vmul.u32.u64.high %v1605_v35, %v1604_v4, %v3281_v31  ;;  %v2149_v35 = vmul.f32 -1.442695, %v3264_v10 }
 0xfff   : > { %v1615_v21 = vadd.s32 1, %v3285_v53 }
0x1000   : > { %vm1614_vm0 = vc.u32 %v3282_v33, %v3284_v34  ;;  %v1613_v52 = vadd.s32 %v3284_v34, %v3282_v33  ;;  %v1787_v34 = vmax.f32 %v3264_v10, 0.0 }
0x1001   : > { %v1616_v3 = vsel %vm1614_vm0, %v1615_v21, %v3285_v53 }
0x1002   : > { %v1617_v54 = vadd.s32 %v1616_v3, %v1612_v38 }
0x1004   : > { %v1618_v40 = vadd.s32 536870912, %v1617_v54 }
0x1006   : > { %v1619_v41 = vshrl.u32 %v1618_v40, 30 }
0x1008   : > { %v1620_v43 = vshll.u32 %v1619_v41, 30  ;;  %v1643_v1 = vsub.s32 4, %v1619_v41 }
0x100a   : > { %v1621_v45 = vsub.s32 %v1617_v54, %v1620_v43  ;;  %v1644_v8 = vsel %vm1559_vm4, %v1643_v1, %v1619_v41  ;;  %v1793_v41 = vunpack.c.h.bf16 %v3248_v36 }
0x100b   : > { %v1646_v9 = vsel %vm1558_vm6, 0, %v1644_v8 }
0x100c   : > { %v1623_v46 = vsub.s32 0, %v1621_v45  ;;  %v1753_v11 = vadd.s32 3, %v1646_v9  ;;  %v1650_v14 = vand.u32 3, %v1646_v9 }
0x100e   : > { %v2142_v47 = vmin.u32 %v1623_v46, %v1621_v45  ;;  %v1754_v12 = vand.u32 3, %v1753_v11  ;;  %vm1655_vm8 = vcmp.eq.s32.totalorder %v1650_v14, 2  ;;  %vm1652_vm10 = vcmp.eq.s32.totalorder %v1650_v14, 0 }
0x100f   : > { %vm1651_vm1 = vcmp.lt.s32.totalorder %v1650_v14, 2 }
0x1010   : > { %v1625_v48 = vclz %v2142_v47  ;;  %vm1759_vm7 = vcmp.eq.s32.totalorder %v1754_v12, 2  ;;  %vm1756_vm9 = vcmp.eq.s32.totalorder %v1754_v12, 0  ;;  %vm1755_vm11 = vcmp.lt.s32.totalorder %v1754_v12, 2 }
0x1012   : > { %v2143_v50 = vadd.s32 4294967294, %v1625_v48 }
0x1014   : > { %vm2144_vm3 = vcmp.lt.s32.totalorder %v2143_v50, 0 }
0x1015   : > { %v1628_v51 = vsel %vm2144_vm3, 0, %v2143_v50 }
0x1016   : > { %v1629_v55 = vsub.s32 32, %v1628_v51  ;;  %v1633_v56 = vsub.s32 4294967266, %v1628_v51  ;;  %v1630_v42 = vshll.u32 %v1621_v45, %v1628_v51 }
0x1018   : > { %v1631_v57 = vshrl.u32 %v1613_v52, %v1629_v55  ;;  %v1634_v59 = vadd.s32 127, %v1633_v56 }
0x101a   : > { %v1632_v2 = vor.u32 %v1631_v57, %v1630_v42  ;;  %v1635_v60 = vshll.u32 %v1634_v59, 23 }
0x101c   : > { %v1636_v61 = vor.u32 4788187, %v1635_v60  ;;  %v1639_v63 = vcvt.s32.f32 %v1632_v2 }
0x101e   : > { %v1637_v62 = vand.u32 2147483647, %v1636_v61 }
0x1020   : > { %v1640_v0 = vmul.f32 %v1639_v63, %v1637_v62 }
0x1022   : > { %v1641_v5 = vxor.u32 2147483648, %v1640_v0 }
0x1024   : > { %v1642_v6 = vsel %vm1559_vm4, %v1641_v5, %v1640_v0 }
0x1025   : > { %v1645_v7 = vsel %vm1558_vm6, %v3264_v10, %v1642_v6 }
0x1026   : > { %2452 = vcosq.f32 %v1645_v7 }
0x1027   : > { %2454 = vsinq.f32 %v1645_v7 }
0x1028   : > { %2456 = vpow2.f32 %v2149_v35 }
0x1030   : > { %v2453_v16 = vpop.eup %2452 }
0x1031   : > { %v2455_v17 = vpop.eup %2454  ;;  %v1656_v18 = vxor.u32 2147483648, %v2453_v16 }
0x1032   : > { %v1653_v19 = vxor.u32 2147483648, %v2455_v17  ;;  %v2457_v27 = vpop.eup %2456 }
0x1033   : > { %v1761_v23 = vsel %vm1759_vm7, %v1656_v18, %v2455_v17  ;;  %v1657_v58 = vsel %vm1655_vm8, %v1656_v18, %v2455_v17  ;;  %v1782_v28 = vadd.f32 1.0, %v2457_v27 }
0x1034   : > { %v1758_v20 = vsel %vm1756_vm9, %v2453_v16, %v1653_v19  ;;  %v1654_v26 = vsel %vm1652_vm10, %v2453_v16, %v1653_v19 }
0x1035   : > { %v1762_v22 = vsel %vm1755_vm11, %v1758_v20, %v1761_v23  ;;  %v1658_v24 = vsel %vm1651_vm1, %v1654_v26, %v1657_v58  ;;  %2458 = vrcp.f32 %v1782_v28 }
0x1036   : > { %v1763_v29 = vsel %vm1649_vm12, nan, %v1762_v22  ;;  %v1659_v49 = vsel %vm1649_vm12, nan, %v1658_v24  ;;  %2460 = vtanh.f32 %v3264_v10 }
0x1037   : > { %1770 = vrot.lane.b32.xlu0 %v1763_v29, %s2746_s9  ;;  %1765 = vrot.lane.b32.xlu1 %v1659_v49, %s2746_s9 }
0x103f   : > { %v2459_v30 = vpop.eup %2458 }
0x1040   : > { %v2461_v4 = vpop.eup %2460 }
0x1041   : > { %v1786_v33 = vadd.f32 %v2461_v4, %v2459_v30 }
0x1043   : > { %v1788_v37 = vadd.f32 %v1787_v34, %v1786_v33 }
0x10a9   : > { %v1771_v32 = vpop.permute.xlu0 %1770  ;;  %v1766_v31 = vpop.permute.xlu1 %1765 }
0x10aa   : > { %v1773_v25 = vadd.f32 %v1771_v32, %v1763_v29  ;;  %v1768_v53 = vadd.f32 %v1766_v31, %v1659_v49 }
0x10ac   : > { %1775 = vrot.lane.b32.xlu0 %v1773_v25, %s2748_s18 }
0x111e   : > { %v1776_v21 = vpop.permute.xlu0 %1775 }
0x111f   : > { %v1778_v38 = vsel %vm686_vm5, %v1768_v53, %v1776_v21 }
0x1120   : > { %v1789_v3 = vadd.f32 %v1788_v37, %v1778_v38 }
0x1122   : > { %v1790_v54 = vmul.f32 0.088388346, %v1789_v3 }
0x1124   : > { %v1794_v40 = vpack.c.bf16 %v1790_v54, %v1790_v54 }
0x1126   : > { %2251 = vmatmul.mubr.msk.bf16.vlgmr.msra.gmra.mrb[12].mxu1 %vm421_vm2, %v1794_v40 }
0x11f9   : > { %v1832_v43 = vpop.f32.mrb[12].mxu1 }
0x11fa   : > { %v1838_v45 = vadd.f32 %v1832_v43, %v1793_v41  ;;  %v2252_v46 = vpop.f32.mrb[13].mxu1 }
0x11fb   : > { %v1835_v47 = vpop.f32.mrb[14].mxu1 }
0x11fc   : > { %2462 = vtanh.f32 %v1838_v45  ;;  %v2253_v48 = vpop.f32.mrb[15].mxu1  ;;  %v2152_v10 = vmul.f32 -1.442695, %v1838_v45 }
0x11fe   : > { %2464 = vpow2.f32 %v2152_v10 }
0x1206   : > { %v2463_v50 = vpop.eup %2462 }
0x1207   : > { %1848 = vrot.lane.b32.xlu1 %v2463_v50, %s2749_s5 }
0x1208   : > { %v2465_v51 = vpop.eup %2464 }
0x1209   : > { %v1842_v52 = vadd.f32 1.0, %v2465_v51 }
0x120b   : > { %2466 = vrcp.f32 %v1842_v52 }
0x1215   : > { %v2467_v55 = vpop.eup %2466 }
0x1216   : > { %v1846_v36 = vmul.f32 %v2467_v55, %v3254_v44 }
0x1279   : > { %v1849_v56 = vpop.permute.xlu1 %1848 }
0x127a   : > { %v1851_v42 = vmul.f32 %v2467_v55, %v1849_v56 }
0x127c   : > { %1853 = vrot.lane.b32.xlu0 %v1851_v42, %s2747_s21 }
0x1280   : > { %788 = vrot.lane.b32.xlu0 %v3125_v39, %s2747_s21 }
0x1284   : > { %1505 = vrot.lane.b32.xlu0 %v3258_v15, %s2747_s21 }
0x12ee   : > { %v1854_v57 = vpop.permute.xlu0 %1853 }
0x12ef   : > { %v1856_v59 = vadd.f32 %v1854_v57, %v1846_v36 }
0x12f1   : > { %2468 = vtanh.f32 %v1856_v59  ;;  %1871 = vrot.lane.b32.xlu0 %v1856_v59, %s2750_s14 }
0x12f2   : > { %v789_v2 = vpop.permute.xlu0 %788 }
0x12f3   : > { %791 = vst.msk [vmem:[%s3033_s22] sm:$0xff] %vm421_vm2, %v789_v2 }
0x12f6   : > { %v1506_v60 = vpop.permute.xlu0 %1505 }
0x12f7   : > { %2139 = vst.msk [vmem:[%s3033_s22 + $0x10] sm:$0xff] %vm421_vm2, %v1506_v60 }
0x12fb   : > { %v2469_v61 = vpop.eup %2468 }
0x12fc   : > { %1859 = vrot.lane.b32.xlu1 %v2469_v61, %s2749_s5 }
0x1300   : > { %1146 = vrot.lane.b32.xlu1 %v3191_v13, %s2747_s21 }
0x1363   : > { %v1872_v39 = vpop.permute.xlu0 %1871 }
0x1364   : > { %1874 = vst.msk [vmem:[#allocation3] sm:$0xff] %vm421_vm2, %v1872_v39  ;;  %1880 = vst.msk [vmem:[#allocation15] sm:$0xff] (!%p2154_p6), %vm421_vm2, %v1872_v39 }
0x136e   : > { %v1860_v44 = vpop.permute.xlu1 %1859 }
0x136f   : > { %v1862_v15 = vmul.f32 %v2467_v55, %v1860_v44 }
0x1371   : > { %1864 = vrot.lane.b32.xlu1 %v1862_v15, %s2747_s21 }
0x1372   : > { %v1147_v62 = vpop.permute.xlu1 %1146 }
0x1373   : > { %2125 = vst.msk [vmem:[%s3033_s22 + $0x8] sm:$0xff] %vm421_vm2, %v1147_v62 }
0x13de   : > { %1878 = sbr.rel (%p2154_p6) target bundleno = 5094 (0x13e6), region = 64 }
0x13e3   : > { %v1865_v63 = vpop.permute.xlu1 %1864 }
0x13e4   : > { %2153 = vst.msk [vmem:[%s3033_s22 + $0x18] sm:$0xff] %vm421_vm2, %v1865_v63  ;;  %1869 = vst.msk [vmem:[#allocation2] sm:$0xff] %vm421_vm2, %v1865_v63 }
0x13e5   : > { %1879 = vst.msk [vmem:[#allocation13] sm:$0xff] %vm421_vm2, %v1865_v63 }
0x13e6 PF: > { %s2751_s20 = smov [#allocation13]   ;;  %s2165_s19 = sshll.u32 %s2722_s27, 9 }
0x13e7   : > { %s1912_s30 = sshll.u32 %s2751_s20, 4  ;;  %p3459_p5 = scmp.ne.s32.totalorder %s3446_s10, 0  ;;  %s1913_s30 = int_to_ptr.vmem [resolvable:$true] %s1912_s30 }
0x13e8   : > { %s2584_s17 = scalar_lea.vmem %s1913_s30, 128  ;;  %p2591_p0 = scmp.lt.s32.totalorder %s1913_s30, %s1913_s30 }
0x13e9   : > { %p2585_p3 = scmp.ne.s32.totalorder %s1913_s30, %s2584_s17  ;;  %p2592_p4 = scmp.lt.s32.totalorder %s2584_s17, %s2584_s17 }
0x13eb   : > { %p2586_p7 = pnand %p2585_p3, %p3459_p5  ;;  %p2593_p2 = por %p2592_p4, %p2591_p0 }
0x13ed   : > { %p2587_p9 = pneg %p2586_p7 }
0x13ef   : > { %p2594_p8 = pnand %p2593_p2, %p2587_p9 }
0x13f1   : > { %2597 = shalt.err (!%p2594_p8)
}
0x13f2   : > { %s2598_s13 = scalar_lea.hbm %s3431_s6, 128 }
0x13f3   : > { %p2599_p12 = scmp.ne.s32.totalorder %s3431_s6, %s2598_s13  ;;  %p2604_p13 = scmp.lt.u32.totalorder %s2598_s13, %s3431_s6 }
0x13f5   : > { %p2600_p1 = pnand %p2599_p12, %p3459_p5 }
0x13f7   : > { %p2601_p11 = pneg %p2600_p1 }
0x13f9   : > { %p2606_p6 = pnand %p2604_p13, %p2601_p11 }
0x13fb   : > { %2609 = shalt.err (!%p2606_p6)
}
0x13fc   : > { %2286 = dma.vmem_to_hbm [thread:$0]  (%p3459_p5), %s1913_s30, 128, %s3431_s6, [#allocation14]  }
0x13fd   : > { %s3460_s20 = sld [smem:[#allocation23_spill]]  ;;  %s1896_s15 = sshll.u32 %s3033_s22, 4  ;;  %s3354_s15 = int_to_ptr.vmem [resolvable:$true] %s1896_s15 }
0x13fe   : > { %s1882_s24 = scalar_lea.sflag [#allocation6], %s3014_s12  ;;  %s2610_s13 = scalar_lea.vmem %s3354_s15, 512 }
0x13ff   : > { %p2611_p3 = scmp.ne.s32.totalorder %s3354_s15, %s2610_s13  ;;  %s2752_s11 = smov [#allocation12]  }
0x1400   : > { %s2614_s23 = sshll.u32 %s2752_s11, 4  ;;  %s2615_s23 = int_to_ptr.vmem [resolvable:$false] %s2614_s23 }
0x1401   : > { %p2612_p7 = pnand %p2611_p3, %p2953_p10  ;;  %s2616_s30 = scalar_lea.vmem %s2615_s23, 1024 }
0x1402   : > { %p2617_p0 = scmp.lt.s32.totalorder %s3354_s15, %s2615_s23  ;;  %p2618_p4 = scmp.lt.s32.totalorder %s2616_s30, %s2610_s13 }
0x1403   : > { %s3351_s17 = scalar_lea.hbm %s3460_s20, %s2165_s19  ;;  %p2613_p9 = pneg %p2612_p7 }
0x1404   : > { %p2619_p2 = por %p2618_p4, %p2617_p0 }
0x1406   : > { %p2620_p8 = pnand %p2619_p2, %p2613_p9 }
0x1408   : > { %2623 = shalt.err (!%p2620_p8)
}
0x1409   : > { %s2624_s22 = scalar_lea.hbm %s3351_s17, 512  ;;  %s2628_s9 = scalar_lea.hbm %s3460_s20, 1024 }
0x140a   : > { %p2625_p12 = scmp.ne.s32.totalorder %s3351_s17, %s2624_s22  ;;  %p2629_p13 = scmp.lt.u32.totalorder %s3351_s17, %s3460_s20 }
0x140b   : > { %p2630_p6 = scmp.lt.u32.totalorder %s2628_s9, %s2624_s22  ;;  %p2632_p7 = scmp.lt.u32.totalorder %s2624_s22, %s3351_s17 }
0x140c   : > { %p2626_p1 = pnand %p2625_p12, %p2953_p10 }
0x140d   : > { %p2631_p3 = por %p2630_p6, %p2629_p13 }
0x140e   : > { %p2627_p11 = pneg %p2626_p1 }
0x140f   : > { %p2633_p9 = por %p2632_p7, %p2631_p3 }
0x1411   : > { %p2634_p0 = pnand %p2633_p9, %p2627_p11 }
0x1413   : > { %2637 = shalt.err (!%p2634_p0)
}
0x1414   : > { %s2753_s5 = smov 128   ;;  %s2754_s14 = smov 8  }
0x1415   : > { %2284 = dma.vmem_to_hbm [thread:$0]  (%p2953_p10), %s3354_s15, 512, %s3351_s17, %s1882_s24, %s2753_s5, %s2753_s5, %s2754_s14  }
0x1416   : > { %s2755_s13 = smov [#allocation15]  }
0x1417   : > { %s1925_s11 = sshll.u32 %s2755_s13, 4  ;;  %s1926_s11 = int_to_ptr.vmem [resolvable:$true] %s1925_s11 }
0x1418   : > { %s2638_s23 = scalar_lea.vmem %s1926_s11, 128  ;;  %p2645_p12 = scmp.lt.s32.totalorder %s1926_s11, %s1926_s11 }
0x1419   : > { %p2639_p4 = scmp.ne.s32.totalorder %s1926_s11, %s2638_s23  ;;  %p2646_p1 = scmp.lt.s32.totalorder %s2638_s23, %s2638_s23 }
0x141b   : > { %p2640_p2 = pnand %p2639_p4, %p3459_p5  ;;  %p2647_p11 = por %p2646_p1, %p2645_p12 }
0x141d   : > { %p2641_p8 = pneg %p2640_p2 }
0x141f   : > { %p2648_p13 = pnand %p2647_p11, %p2641_p8 }
0x1421   : > { %2651 = shalt.err (!%p2648_p13)
}
0x1422   : > { %s3461_s19 = sld [smem:[#allocation24_spill]] }
0x1428   : > { %s2652_s16 = scalar_lea.hbm %s3461_s19, 128 }
0x1429   : > { %p2653_p10 = scmp.ne.s32.totalorder %s3461_s19, %s2652_s16  ;;  %p2658_p7 = scmp.lt.u32.totalorder %s2652_s16, %s3461_s19 }
0x142b   : > { %p2654_p6 = pnand %p2653_p10, %p3459_p5 }
0x142d   : > { %p2655_p3 = pneg %p2654_p6 }
0x142f   : > { %p2660_p9 = pnand %p2658_p7, %p2655_p3 }
0x1431   : > { %2663 = shalt.err (!%p2660_p9)
}
0x1432   : > { %2288 = dma.vmem_to_hbm [thread:$0]  (%p3459_p5), %s1926_s11, 128, %s3461_s19, [#allocation14]  }
0x1433   : > { %2701 = dma.done.wait (%p3459_p5), [#allocation14], 256  }
0x1434   : > { %2703 = vsyncadd (%p3459_p5), [#allocation14], 4294967040 }
0x1435 PF: > { %s3462_s21 = sld [smem:[#allocation21_spill]]  ;;  %s3463_s18 = sld [smem:[#allocation22_spill]] }
0x1436   : > { %p3465_p4 = scmp.ge.s32.totalorder %s2730_s29, 2 }
0x143b   : > { %s1945_s5 = sand.u32 1, %s3462_s21   ;;  %p3464_p0 = scmp.ne.s32.totalorder %s3463_s18, 0 }
0x143c   : > { %s1946_s14 = scalar_lea.sflag [#allocation6], %s1945_s5 }
0x143d   : > { %p2309_p2 = pnand %p3465_p4, %p3464_p0 }
0x143f   : > { %2705 = dma.done.wait (!%p2309_p2), %s1946_s14, 512  }
0x1440   : > { %2707 = vsyncadd (!%p2309_p2), %s1946_s14, 4294966784  ;;  %s27_s29 = sadd.s32 1, %s2730_s29   ;;  %s3466_s24 = smov %s2714_s25 }
0x1441   : > { %p24_p8 = scmp.ge.s32.totalorder %s27_s29, 4   ;;  %s3467_s25 = smov %s2718_s26 }
0x1442   : > { %s3468_s26 = smov %s2965_s8  ;;  %s3469_s27 = smov %s2726_s28 }
0x1443   : > { %s3470_s28 = smov %s3472_s7  ;;  %26 = sbr.rel (!%p24_p8) target bundleno = 12 (0xc), region = 133 }
0x144a   :  { %1951 = vsyncpa [#allocation5], 1 }
0x144b   :  { %1953 = vsyncpa [#allocation5 + $0x1], 1 }
0x144c   :  { %1954 = vsyncpa [#allocation8], 1 }
0x144d   :  { %1955 = vsyncpa [#allocation11], 1 }
0x144e   :  { %1956 = vsyncpa [#allocation6], 1 }
0x144f   :  { %1958 = vsyncpa [#allocation6 + $0x1], 1 }
0x1450   :  { %1959 = vsyncpa [#allocation14], 1 }

</bundles_post_ra>
